<compile_context>
chip_gen: v7x
topology: tpu7x:2x2x1
jax: 0.10.0
libtpu: 0.0.40
codegen_flags: <defaults>
</compile_context>

<pallas_src>
import jax
import jax.numpy as jnp
from jax import lax
from jax.experimental import pallas as pl
from jax.experimental.pallas import tpu as pltpu
import numpy as np


# ----------------------------------------------------------------------------
# Kernel
# ----------------------------------------------------------------------------
def _make_kernel(depth, bblk, N, F, nhid, out_w):
    BN = bblk * N

    def kernel(*refs):
        # ---- unpack refs (order fixed by wrapper) ----
        x_ref, adjn_ref, flags_ref = refs[0:3]
        i = 3
        layers = []
        for _ in range(depth):
            layers.append(refs[i:i + 3])       # fused W_l, fused b_l, conv bias
            i += 3
        wst_parts = refs[i:i + depth + 1]; i += depth + 1   # concat sigmoid|tanh weights
        bst_ref = refs[i]; i += 1
        fw1_ref, fb1_ref, fw2_ref, fb2_ref = refs[i:i + 4]; i += 4
        out_ref = refs[i]

        x = x_ref[...].reshape(BN, F)              # (Bblk*N, F)
        adj_n = adjn_ref[...]                      # (Bblk, N, N), pre-normalized
        fmask = flags_ref[...].reshape(BN, 1)      # (Bblk*N, 1)

        # readout pre-activation accumulator (sigmoid | tanh halves concatenated)
        pre = bst_ref[...] + jnp.dot(x, wst_parts[0][...],
                                     preferred_element_type=jnp.float32)

        h = x
        for l, (wl_ref, bl_ref, cb_ref) in enumerate(layers):
            # fused Linear then GCN lin:  (h @ lin_w + lin_b) @ conv_w == h @ W_l + b_l
            h = jnp.dot(h, wl_ref[...],
                        preferred_element_type=jnp.float32) + bl_ref[...]
            # per-graph message passing: adj_n @ h
            msg = jnp.einsum('bnm,bmk->bnk', adj_n, h.reshape(bblk, N, nhid),
                             preferred_element_type=jnp.float32)
            h = jnp.tanh(msg.reshape(BN, nhid) + cb_ref[...]) * fmask
            # accumulate this layer's readout contribution immediately
            pre = pre + jnp.dot(h, wst_parts[l + 1][...],
                                preferred_element_type=jnp.float32)

        pre_s = pre[:, :nhid]
        pre_t = pre[:, nhid:]
        gated = jax.nn.sigmoid(pre_s) * jnp.tanh(pre_t)             # (Bblk*N, nhid)
        pooled = jnp.sum(gated.reshape(bblk, N, nhid), axis=1)      # (Bblk, nhid)
        emb = jnp.tanh(pooled)                                      # (Bblk, nhid)

        # ---- final MLP (dropout = identity in eval mode) ----
        h1 = jnp.maximum(
            jnp.dot(emb, fw1_ref[...], preferred_element_type=jnp.float32)
            + fb1_ref[...], jnp.float32(0.0))
        pred = jnp.dot(h1, fw2_ref[...], preferred_element_type=jnp.float32) \
            + fb2_ref[...]                                          # (Bblk, 2)
        ci = lax.broadcasted_iota(jnp.int32, pred.shape, 1)
        pred = jnp.where(ci == 0, jax.nn.sigmoid(pred), pred)

        # ---- lane-dense output slab: [ embeds | preds | zero pad ] ----
        out_ref[:, 0:nhid] = emb
        out_ref[:, nhid:nhid + 2] = pred
        out_ref[:, nhid + 2:] = jnp.zeros((bblk, out_w - nhid - 2), jnp.float32)

    return kernel


# ----------------------------------------------------------------------------
# Wrapper
# ----------------------------------------------------------------------------
def regressor_forward(x, adj, flags, params, *, depth, nhid, bblk=8):
    B, N, F = x.shape
    x = x.astype(jnp.float32)
    adj = adj.astype(jnp.float32)
    flags3 = flags.reshape(B, N, 1).astype(jnp.float32)

    # ---- hoisted DenseGCNConv adjacency normalization (diag:=1, D^-1/2 A D^-1/2) ----
    eye = jnp.eye(N, dtype=jnp.float32)[None]
    adj_sl = jnp.where(eye > 0, 1.0, adj)
    deg = adj_sl.sum(-1, keepdims=True)
    dis = lax.rsqrt(jnp.maximum(deg, 1.0))
    adj_n = dis * adj_sl * jnp.swapaxes(dis, -1, -2)

    # ---- unpack raw params and fuse weights (exact algebraic fusion) ----
    i = 0
    layers_raw = []
    for _ in range(depth):
        layers_raw.append(params[i:i + 4]); i += 4              # lin_w, lin_b, conv_w, conv_b
    ws_parts = params[i:i + depth + 1]; i += depth + 1
    bs = params[i]; i += 1
    wt_parts = params[i:i + depth + 1]; i += depth + 1
    bt = params[i]; i += 1
    fw1, fb1, fw2, fb2 = params[i:i + 4]

    fused_layers = []
    for (lw, lb, cw, cb) in layers_raw:
        fused_layers += [lw @ cw, lb @ cw, cb]                  # W_l, b_l, conv bias
    wst_parts = [jnp.concatenate([ws_parts[l], wt_parts[l]], axis=-1)
                 for l in range(depth + 1)]                     # (in_dim, 2*nhid)
    bst = jnp.concatenate([bs, bt], axis=-1)                    # (1, 2*nhid)
    param_inputs = fused_layers + wst_parts + [bst, fw1, fb1, fw2, fb2]

    # ---- pad batch to a multiple of the per-step graph block ----
    Bp = ((B + bblk - 1) // bblk) * bblk
    if Bp != B:
        pad = Bp - B
        x = jnp.pad(x, ((0, pad), (0, 0), (0, 0)))
        adj_n = jnp.pad(adj_n, ((0, pad), (0, 0), (0, 0)))
        flags3 = jnp.pad(flags3, ((0, pad), (0, 0), (0, 0)))

    out_w = ((nhid + 2 + 127) // 128) * 128                     # lane-dense output slab width
    grid = (Bp // bblk,)

    def bcast_spec(shape):
        nd = len(shape)
        return pl.BlockSpec(shape, lambda b, _nd=nd: (0,) * _nd)

    in_specs = [
        pl.BlockSpec((bblk, N, F), lambda b: (b, 0, 0)),
        pl.BlockSpec((bblk, N, N), lambda b: (b, 0, 0)),
        pl.BlockSpec((bblk, N, 1), lambda b: (b, 0, 0)),
    ] + [bcast_spec(p.shape) for p in param_inputs]

    out_specs = pl.BlockSpec((bblk, out_w), lambda b: (b, 0))
    out_shape = jax.ShapeDtypeStruct((Bp, out_w), jnp.float32)

    kernel = _make_kernel(depth, bblk, N, F, nhid, out_w)

    slab = pl.pallas_call(
        kernel,
        out_shape=out_shape,
        grid_spec=pltpu.PrefetchScalarGridSpec(
            num_scalar_prefetch=0,
            grid=grid,
            in_specs=in_specs,
            out_specs=out_specs,
        ),
        compiler_params=pltpu.CompilerParams(
            dimension_semantics=("parallel",)),
    )(x, adj_n, flags3, *param_inputs)

    preds = slab[:B, nhid:nhid + 2]
    embeds = slab[:B, :nhid]
    return preds, embeds


# ----------------------------------------------------------------------------
# Deterministic parameter init (synthetic; shapes follow Regressor.__init__)
# Weights are stored pre-transposed for right-multiplication (in_dim, out_dim).
# ----------------------------------------------------------------------------
def init_params(key, F, nhid, depth):
    keys = jax.random.split(key, 64)
    k = iter(keys)

    def w(shape):
        return (jax.random.normal(next(k), shape, jnp.float32) * 0.1)

    params = []
    # per-layer: Linear(in, nhid) + DenseGCNConv(nhid, nhid)
    for l in range(depth):
        in_dim = F if l == 0 else nhid
        params.append(w((in_dim, nhid)))        # lin weight^T
        params.append(w((1, nhid)))             # lin bias
        params.append(w((nhid, nhid)))          # conv lin weight^T (bias=False)
        params.append(w((1, nhid)))             # conv bias
    # sigmoid_linear: Linear(F + depth*nhid, nhid), split along input dim
    params.append(w((F, nhid)))
    for _ in range(depth):
        params.append(w((nhid, nhid)))
    params.append(w((1, nhid)))                 # bias
    # tanh_linear: same split
    params.append(w((F, nhid)))
    for _ in range(depth):
        params.append(w((nhid, nhid)))
    params.append(w((1, nhid)))                 # bias
    # final_linear: Linear(nhid, nhid) -> ReLU -> Dropout -> Linear(nhid, 2)
    params.append(w((nhid, nhid)))
    params.append(w((1, nhid)))
    params.append(w((nhid, 2)))
    params.append(w((1, 2)))
    return params


# ----------------------------------------------------------------------------
# Pure-JAX reference (original, un-fused math) for correctness check
# ----------------------------------------------------------------------------
def ref_forward(x, adj, flags, params, *, depth, nhid):
    B, N, F = x.shape
    flags3 = flags.reshape(B, N, 1)

    i = 0
    layers = []
    for _ in range(depth):
        layers.append(params[i:i + 4]); i += 4
    ws_parts = params[i:i + depth + 1]; i += depth + 1
    bs = params[i]; i += 1
    wt_parts = params[i:i + depth + 1]; i += depth + 1
    bt = params[i]; i += 1
    fw1, fb1, fw2, fb2 = params[i:i + 4]

    eye = jnp.eye(N, dtype=jnp.float32)[None]
    adj_sl = jnp.where(eye > 0, 1.0, adj)
    deg = adj_sl.sum(-1, keepdims=True)
    dis = lax.rsqrt(jnp.maximum(deg, 1.0))
    adj_n = dis * adj_sl * jnp.swapaxes(dis, -1, -2)

    hs = []
    h = x
    for (lw, lb, cw, cb) in layers:
        h = h @ lw + lb
        h = adj_n @ (h @ cw) + cb
        h = jnp.tanh(h) * flags3
        hs.append(h)

    pre_s = bs + x @ ws_parts[0]
    pre_t = bt + x @ wt_parts[0]
    for l in range(depth):
        pre_s = pre_s + hs[l] @ ws_parts[l + 1]
        pre_t = pre_t + hs[l] @ wt_parts[l + 1]
    pooled = (jax.nn.sigmoid(pre_s) * jnp.tanh(pre_t)).sum(axis=1)
    embeds = jnp.tanh(pooled)
    h1 = jnp.maximum(embeds @ fw1 + fb1, 0.0)
    preds = h1 @ fw2 + fb2
    preds = preds.at[:, 0].set(jax.nn.sigmoid(preds[:, 0]))
    return preds, embeds


# ----------------------------------------------------------------------------
if __name__ == "__main__":
    # Small shapes consistent with the module
    B, N, F = 16, 16, 4       # batch, max_node_num, max_feat_num
    depth, nhid = 2, 32
    bblk = 8                  # 8 graphs/step -> 128-row matmuls, grid=(2,) for v7x 2-TC
    # dropout = 0.1 (identity in eval mode)

    key = jax.random.PRNGKey(0)
    kx, ka, kf, kp = jax.random.split(key, 4)

    x = jax.random.normal(kx, (B, N, F), jnp.float32)
    a = (jax.random.uniform(ka, (B, N, N)) > 0.6).astype(jnp.float32)
    adj = jnp.maximum(a, jnp.swapaxes(a, -1, -2))            # symmetric 0/1 adjacency
    adj = adj * (1.0 - jnp.eye(N, dtype=jnp.float32)[None])  # zero diag (normalizer sets it)
    flags = (jax.random.uniform(kf, (B, N)) > 0.25).astype(jnp.float32)

    params = init_params(kp, F, nhid, depth)

    preds, embeds = regressor_forward(x, adj, flags, params,
                                      depth=depth, nhid=nhid, bblk=bblk)
    jax.block_until_ready((preds, embeds))

    preds_ref, embeds_ref = ref_forward(x, adj, flags, params, depth=depth, nhid=nhid)
    np.testing.assert_allclose(np.asarray(preds), np.asarray(preds_ref),
                               rtol=1e-4, atol=1e-4)
    np.testing.assert_allclose(np.asarray(embeds), np.asarray(embeds_ref),
                               rtol=1e-4, atol=1e-4)

    print("KERNEL_OK")
</pallas_src>

<mosaic_0001>
module attributes {stable_mosaic.version = 11 : i64} {
  func.func @kernel(%arg0: i32, %arg1: memref<8x16x4xf32, #tpu.memory_space<vmem>>, %arg2: memref<8x16x16xf32, #tpu.memory_space<vmem>>, %arg3: memref<8x16x1xf32, #tpu.memory_space<vmem>>, %arg4: memref<4x32xf32, #tpu.memory_space<vmem>>, %arg5: memref<1x32xf32, #tpu.memory_space<vmem>>, %arg6: memref<1x32xf32, #tpu.memory_space<vmem>>, %arg7: memref<32x32xf32, #tpu.memory_space<vmem>>, %arg8: memref<1x32xf32, #tpu.memory_space<vmem>>, %arg9: memref<1x32xf32, #tpu.memory_space<vmem>>, %arg10: memref<4x64xf32, #tpu.memory_space<vmem>>, %arg11: memref<32x64xf32, #tpu.memory_space<vmem>>, %arg12: memref<32x64xf32, #tpu.memory_space<vmem>>, %arg13: memref<1x64xf32, #tpu.memory_space<vmem>>, %arg14: memref<32x32xf32, #tpu.memory_space<vmem>>, %arg15: memref<1x32xf32, #tpu.memory_space<vmem>>, %arg16: memref<32x2xf32, #tpu.memory_space<vmem>>, %arg17: memref<1x2xf32, #tpu.memory_space<vmem>>, %arg18: memref<8x128xf32, #tpu.memory_space<vmem>>) attributes {dimension_semantics = [#tpu.dimension_semantics<parallel>], iteration_bounds = array<i64: 2>, scalar_prefetch = 0 : i64, scratch_operands = 0 : i64, tpu.core_type = #tpu.core_type<tc>, window_params = [{transform_indices = @transform_0, window_bounds = array<i64: 8, 16, 4>}, {transform_indices = @transform_1, window_bounds = array<i64: 8, 16, 16>}, {transform_indices = @transform_2, window_bounds = array<i64: 8, 16, 1>}, {pipeline_mode = #tpu.pipeline_mode<synchronous>, transform_indices = @transform_3, window_bounds = array<i64: 4, 32>}, {pipeline_mode = #tpu.pipeline_mode<synchronous>, transform_indices = @transform_4, window_bounds = array<i64: 1, 32>}, {pipeline_mode = #tpu.pipeline_mode<synchronous>, transform_indices = @transform_5, window_bounds = array<i64: 1, 32>}, {pipeline_mode = #tpu.pipeline_mode<synchronous>, transform_indices = @transform_6, window_bounds = array<i64: 32, 32>}, {pipeline_mode = #tpu.pipeline_mode<synchronous>, transform_indices = @transform_7, window_bounds = array<i64: 1, 32>}, {pipeline_mode = #tpu.pipeline_mode<synchronous>, transform_indices = @transform_8, window_bounds = array<i64: 1, 32>}, {pipeline_mode = #tpu.pipeline_mode<synchronous>, transform_indices = @transform_9, window_bounds = array<i64: 4, 64>}, {pipeline_mode = #tpu.pipeline_mode<synchronous>, transform_indices = @transform_10, window_bounds = array<i64: 32, 64>}, {pipeline_mode = #tpu.pipeline_mode<synchronous>, transform_indices = @transform_11, window_bounds = array<i64: 32, 64>}, {pipeline_mode = #tpu.pipeline_mode<synchronous>, transform_indices = @transform_12, window_bounds = array<i64: 1, 64>}, {pipeline_mode = #tpu.pipeline_mode<synchronous>, transform_indices = @transform_13, window_bounds = array<i64: 32, 32>}, {pipeline_mode = #tpu.pipeline_mode<synchronous>, transform_indices = @transform_14, window_bounds = array<i64: 1, 32>}, {pipeline_mode = #tpu.pipeline_mode<synchronous>, transform_indices = @transform_15, window_bounds = array<i64: 32, 2>}, {pipeline_mode = #tpu.pipeline_mode<synchronous>, transform_indices = @transform_16, window_bounds = array<i64: 1, 2>}, {transform_indices = @transform_17, window_bounds = array<i64: 8, 128>}]} {
    %c0 = arith.constant 0 : index
    %c0_0 = arith.constant 0 : index
    %c0_1 = arith.constant 0 : index
    %0 = vector.load %arg1[%c0, %c0_0, %c0_1] : memref<8x16x4xf32, #tpu.memory_space<vmem>>, vector<8x16x4xf32>
    %1 = vector.shape_cast %0 : vector<8x16x4xf32> to vector<128x4xf32>
    %c0_2 = arith.constant 0 : index
    %c0_3 = arith.constant 0 : index
    %c0_4 = arith.constant 0 : index
    %2 = vector.load %arg2[%c0_2, %c0_3, %c0_4] : memref<8x16x16xf32, #tpu.memory_space<vmem>>, vector<8x16x16xf32>
    %c0_5 = arith.constant 0 : index
    %c0_6 = arith.constant 0 : index
    %c0_7 = arith.constant 0 : index
    %3 = vector.load %arg3[%c0_5, %c0_6, %c0_7] : memref<8x16x1xf32, #tpu.memory_space<vmem>>, vector<8x16x1xf32>
    %4 = vector.shape_cast %3 : vector<8x16x1xf32> to vector<128x1xf32>
    %c0_8 = arith.constant 0 : index
    %c0_9 = arith.constant 0 : index
    %5 = vector.load %arg13[%c0_8, %c0_9] : memref<1x64xf32, #tpu.memory_space<vmem>>, vector<1x64xf32>
    %c0_10 = arith.constant 0 : index
    %c0_11 = arith.constant 0 : index
    %6 = vector.load %arg10[%c0_10, %c0_11] : memref<4x64xf32, #tpu.memory_space<vmem>>, vector<4x64xf32>
    %cst = arith.constant dense<0.000000e+00> : vector<128x64xf32>
    %7 = tpu.matmul %1, %6, %cst {dimension_numbers = #tpu.dot_dimension_numbers<[1], [0], [0], [1], [0, 0, 1, 1], [], []>} : vector<128x4xf32>, vector<4x64xf32>, vector<128x64xf32> -> vector<128x64xf32>
    %8 = vector.broadcast %5 : vector<1x64xf32> to vector<128x64xf32>
    %9 = arith.addf %8, %7 : vector<128x64xf32>
    %c0_12 = arith.constant 0 : index
    %c0_13 = arith.constant 0 : index
    %10 = vector.load %arg4[%c0_12, %c0_13] : memref<4x32xf32, #tpu.memory_space<vmem>>, vector<4x32xf32>
    %cst_14 = arith.constant dense<0.000000e+00> : vector<128x32xf32>
    %11 = tpu.matmul %1, %10, %cst_14 {dimension_numbers = #tpu.dot_dimension_numbers<[1], [0], [0], [1], [0, 0, 1, 1], [], []>} : vector<128x4xf32>, vector<4x32xf32>, vector<128x32xf32> -> vector<128x32xf32>
    %c0_15 = arith.constant 0 : index
    %c0_16 = arith.constant 0 : index
    %12 = vector.load %arg5[%c0_15, %c0_16] : memref<1x32xf32, #tpu.memory_space<vmem>>, vector<1x32xf32>
    %13 = vector.broadcast %12 : vector<1x32xf32> to vector<128x32xf32>
    %14 = arith.addf %11, %13 : vector<128x32xf32>
    %15 = vector.shape_cast %14 : vector<128x32xf32> to vector<8x16x32xf32>
    "tpu.trace_start"() <{level = 10 : i32, message = "bnm,bmk->bnk"}> : () -> ()
    %cst_17 = arith.constant dense<0.000000e+00> : vector<8x16x32xf32>
    %16 = tpu.matmul %2, %15, %cst_17 {dimension_numbers = #tpu.dot_dimension_numbers<[2], [1], [1], [2], [0, 0, 0, 1, 1, 2], [0], [0]>} : vector<8x16x16xf32>, vector<8x16x32xf32>, vector<8x16x32xf32> -> vector<8x16x32xf32>
    "tpu.trace_stop"() : () -> ()
    %17 = vector.shape_cast %16 : vector<8x16x32xf32> to vector<128x32xf32>
    %c0_18 = arith.constant 0 : index
    %c0_19 = arith.constant 0 : index
    %18 = vector.load %arg6[%c0_18, %c0_19] : memref<1x32xf32, #tpu.memory_space<vmem>>, vector<1x32xf32>
    %19 = vector.broadcast %18 : vector<1x32xf32> to vector<128x32xf32>
    %20 = arith.addf %17, %19 : vector<128x32xf32>
    %21 = math.tanh %20 : vector<128x32xf32>
    %22 = vector.broadcast %4 : vector<128x1xf32> to vector<128x32xf32>
    %23 = arith.mulf %21, %22 : vector<128x32xf32>
    %c0_20 = arith.constant 0 : index
    %c0_21 = arith.constant 0 : index
    %24 = vector.load %arg11[%c0_20, %c0_21] : memref<32x64xf32, #tpu.memory_space<vmem>>, vector<32x64xf32>
    %cst_22 = arith.constant dense<0.000000e+00> : vector<128x64xf32>
    %25 = tpu.matmul %23, %24, %cst_22 {dimension_numbers = #tpu.dot_dimension_numbers<[1], [0], [0], [1], [0, 0, 1, 1], [], []>} : vector<128x32xf32>, vector<32x64xf32>, vector<128x64xf32> -> vector<128x64xf32>
    %26 = arith.addf %9, %25 : vector<128x64xf32>
    %c0_23 = arith.constant 0 : index
    %c0_24 = arith.constant 0 : index
    %27 = vector.load %arg7[%c0_23, %c0_24] : memref<32x32xf32, #tpu.memory_space<vmem>>, vector<32x32xf32>
    %cst_25 = arith.constant dense<0.000000e+00> : vector<128x32xf32>
    %28 = tpu.matmul %23, %27, %cst_25 {dimension_numbers = #tpu.dot_dimension_numbers<[1], [0], [0], [1], [0, 0, 1, 1], [], []>} : vector<128x32xf32>, vector<32x32xf32>, vector<128x32xf32> -> vector<128x32xf32>
    %c0_26 = arith.constant 0 : index
    %c0_27 = arith.constant 0 : index
    %29 = vector.load %arg8[%c0_26, %c0_27] : memref<1x32xf32, #tpu.memory_space<vmem>>, vector<1x32xf32>
    %30 = vector.broadcast %29 : vector<1x32xf32> to vector<128x32xf32>
    %31 = arith.addf %28, %30 : vector<128x32xf32>
    %32 = vector.shape_cast %31 : vector<128x32xf32> to vector<8x16x32xf32>
    "tpu.trace_start"() <{level = 10 : i32, message = "bnm,bmk->bnk"}> : () -> ()
    %cst_28 = arith.constant dense<0.000000e+00> : vector<8x16x32xf32>
    %33 = tpu.matmul %2, %32, %cst_28 {dimension_numbers = #tpu.dot_dimension_numbers<[2], [1], [1], [2], [0, 0, 0, 1, 1, 2], [0], [0]>} : vector<8x16x16xf32>, vector<8x16x32xf32>, vector<8x16x32xf32> -> vector<8x16x32xf32>
    "tpu.trace_stop"() : () -> ()
    %34 = vector.shape_cast %33 : vector<8x16x32xf32> to vector<128x32xf32>
    %c0_29 = arith.constant 0 : index
    %c0_30 = arith.constant 0 : index
    %35 = vector.load %arg9[%c0_29, %c0_30] : memref<1x32xf32, #tpu.memory_space<vmem>>, vector<1x32xf32>
    %36 = vector.broadcast %35 : vector<1x32xf32> to vector<128x32xf32>
    %37 = arith.addf %34, %36 : vector<128x32xf32>
    %38 = math.tanh %37 : vector<128x32xf32>
    %39 = vector.broadcast %4 : vector<128x1xf32> to vector<128x32xf32>
    %40 = arith.mulf %38, %39 : vector<128x32xf32>
    %c0_31 = arith.constant 0 : index
    %c0_32 = arith.constant 0 : index
    %41 = vector.load %arg12[%c0_31, %c0_32] : memref<32x64xf32, #tpu.memory_space<vmem>>, vector<32x64xf32>
    %cst_33 = arith.constant dense<0.000000e+00> : vector<128x64xf32>
    %42 = tpu.matmul %40, %41, %cst_33 {dimension_numbers = #tpu.dot_dimension_numbers<[1], [0], [0], [1], [0, 0, 1, 1], [], []>} : vector<128x32xf32>, vector<32x64xf32>, vector<128x64xf32> -> vector<128x64xf32>
    %43 = arith.addf %26, %42 : vector<128x64xf32>
    %44 = vector.extract_strided_slice %43 {offsets = [0, 0], sizes = [128, 32], strides = [1, 1]} : vector<128x64xf32> to vector<128x32xf32>
    %45 = vector.extract_strided_slice %43 {offsets = [0, 32], sizes = [128, 32], strides = [1, 1]} : vector<128x64xf32> to vector<128x32xf32>
    %46 = arith.negf %44 : vector<128x32xf32>
    %47 = math.exp %46 : vector<128x32xf32>
    %cst_34 = arith.constant 1.000000e+00 : f32
    %48 = vector.broadcast %cst_34 : f32 to vector<128x32xf32>
    %49 = arith.addf %48, %47 : vector<128x32xf32>
    %50 = arith.divf %48, %49 : vector<128x32xf32>
    %51 = math.tanh %45 : vector<128x32xf32>
    %52 = arith.mulf %50, %51 : vector<128x32xf32>
    %53 = vector.shape_cast %52 : vector<128x32xf32> to vector<8x16x32xf32>
    %cst_35 = arith.constant dense<0.000000e+00> : vector<8x32xf32>
    %54 = vector.multi_reduction <add>, %53, %cst_35 [1] : vector<8x16x32xf32> to vector<8x32xf32>
    %55 = math.tanh %54 : vector<8x32xf32>
    %c0_36 = arith.constant 0 : index
    %c0_37 = arith.constant 0 : index
    %56 = vector.load %arg14[%c0_36, %c0_37] : memref<32x32xf32, #tpu.memory_space<vmem>>, vector<32x32xf32>
    %cst_38 = arith.constant dense<0.000000e+00> : vector<8x32xf32>
    %57 = tpu.matmul %55, %56, %cst_38 {dimension_numbers = #tpu.dot_dimension_numbers<[1], [0], [0], [1], [0, 0, 1, 1], [], []>} : vector<8x32xf32>, vector<32x32xf32>, vector<8x32xf32> -> vector<8x32xf32>
    %c0_39 = arith.constant 0 : index
    %c0_40 = arith.constant 0 : index
    %58 = vector.load %arg15[%c0_39, %c0_40] : memref<1x32xf32, #tpu.memory_space<vmem>>, vector<1x32xf32>
    %59 = vector.broadcast %58 : vector<1x32xf32> to vector<8x32xf32>
    %60 = arith.addf %57, %59 : vector<8x32xf32>
    %cst_41 = arith.constant 0.000000e+00 : f32
    %61 = vector.broadcast %cst_41 : f32 to vector<8x32xf32>
    %62 = arith.maximumf %60, %61 : vector<8x32xf32>
    %c0_42 = arith.constant 0 : index
    %c0_43 = arith.constant 0 : index
    %63 = vector.load %arg16[%c0_42, %c0_43] : memref<32x2xf32, #tpu.memory_space<vmem>>, vector<32x2xf32>
    %cst_44 = arith.constant dense<0.000000e+00> : vector<8x2xf32>
    %64 = tpu.matmul %62, %63, %cst_44 {dimension_numbers = #tpu.dot_dimension_numbers<[1], [0], [0], [1], [0, 0, 1, 1], [], []>} : vector<8x32xf32>, vector<32x2xf32>, vector<8x2xf32> -> vector<8x2xf32>
    %c0_45 = arith.constant 0 : index
    %c0_46 = arith.constant 0 : index
    %65 = vector.load %arg17[%c0_45, %c0_46] : memref<1x2xf32, #tpu.memory_space<vmem>>, vector<1x2xf32>
    %66 = vector.broadcast %65 : vector<1x2xf32> to vector<8x2xf32>
    %67 = arith.addf %64, %66 : vector<8x2xf32>
    %68 = tpu.iota {dimensions = array<i32: 1>} : vector<8x2xi32>
    %c0_i32 = arith.constant 0 : i32
    %69 = vector.broadcast %c0_i32 : i32 to vector<8x2xi32>
    %70 = arith.cmpi eq, %68, %69 : vector<8x2xi32>
    %71 = arith.negf %67 : vector<8x2xf32>
    %72 = math.exp %71 : vector<8x2xf32>
    %cst_47 = arith.constant 1.000000e+00 : f32
    %73 = vector.broadcast %cst_47 : f32 to vector<8x2xf32>
    %74 = arith.addf %73, %72 : vector<8x2xf32>
    %75 = arith.divf %73, %74 : vector<8x2xf32>
    %76 = arith.select %70, %75, %67 : vector<8x2xi1>, vector<8x2xf32>
    %c0_48 = arith.constant 0 : index
    %c0_49 = arith.constant 0 : index
    %77 = vector.load %arg18[%c0_48, %c0_49] : memref<8x128xf32, #tpu.memory_space<vmem>>, vector<8x32xf32>
    tpu.vector_store %arg18[%c0_48, %c0_49], %55 {strides = array<i32>} : memref<8x128xf32, #tpu.memory_space<vmem>>, vector<8x32xf32>,
    %c0_50 = arith.constant 0 : index
    %c32 = arith.constant 32 : index
    %78 = vector.load %arg18[%c0_50, %c32] : memref<8x128xf32, #tpu.memory_space<vmem>>, vector<8x2xf32>
    tpu.vector_store %arg18[%c0_50, %c32], %76 {strides = array<i32>} : memref<8x128xf32, #tpu.memory_space<vmem>>, vector<8x2xf32>,
    %cst_51 = arith.constant 0.000000e+00 : f32
    %79 = vector.broadcast %cst_51 : f32 to vector<8x94xf32>
    %c0_52 = arith.constant 0 : index
    %c34 = arith.constant 34 : index
    %80 = vector.load %arg18[%c0_52, %c34] : memref<8x128xf32, #tpu.memory_space<vmem>>, vector<8x94xf32>
    tpu.vector_store %arg18[%c0_52, %c34], %79 {strides = array<i32>} : memref<8x128xf32, #tpu.memory_space<vmem>>, vector<8x94xf32>,
    return
  }
  func.func @transform_0(%arg0: i32) -> (i32, i32, i32) {
    %c0_i32 = arith.constant 0 : i32
    %c0_i32_0 = arith.constant 0 : i32
    %c0_i32_1 = arith.constant 0 : i32
    return %arg0, %c0_i32, %c0_i32_0 : i32, i32, i32
  }
  func.func @transform_1(%arg0: i32) -> (i32, i32, i32) {
    %c0_i32 = arith.constant 0 : i32
    %c0_i32_0 = arith.constant 0 : i32
    %c0_i32_1 = arith.constant 0 : i32
    return %arg0, %c0_i32, %c0_i32_0 : i32, i32, i32
  }
  func.func @transform_2(%arg0: i32) -> (i32, i32, i32) {
    %c0_i32 = arith.constant 0 : i32
    %c0_i32_0 = arith.constant 0 : i32
    %c0_i32_1 = arith.constant 0 : i32
    return %arg0, %c0_i32, %c0_i32_0 : i32, i32, i32
  }
  func.func @transform_3(%arg0: i32) -> (i32, i32) {
    %c0_i32 = arith.constant 0 : i32
    %c0_i32_0 = arith.constant 0 : i32
    %c0_i32_1 = arith.constant 0 : i32
    return %c0_i32, %c0_i32_0 : i32, i32
  }
  func.func @transform_4(%arg0: i32) -> (i32, i32) {
    %c0_i32 = arith.constant 0 : i32
    %c0_i32_0 = arith.constant 0 : i32
    %c0_i32_1 = arith.constant 0 : i32
    return %c0_i32, %c0_i32_0 : i32, i32
  }
  func.func @transform_5(%arg0: i32) -> (i32, i32) {
    %c0_i32 = arith.constant 0 : i32
    %c0_i32_0 = arith.constant 0 : i32
    %c0_i32_1 = arith.constant 0 : i32
    return %c0_i32, %c0_i32_0 : i32, i32
  }
  func.func @transform_6(%arg0: i32) -> (i32, i32) {
    %c0_i32 = arith.constant 0 : i32
    %c0_i32_0 = arith.constant 0 : i32
    %c0_i32_1 = arith.constant 0 : i32
    return %c0_i32, %c0_i32_0 : i32, i32
  }
  func.func @transform_7(%arg0: i32) -> (i32, i32) {
    %c0_i32 = arith.constant 0 : i32
    %c0_i32_0 = arith.constant 0 : i32
    %c0_i32_1 = arith.constant 0 : i32
    return %c0_i32, %c0_i32_0 : i32, i32
  }
  func.func @transform_8(%arg0: i32) -> (i32, i32) {
    %c0_i32 = arith.constant 0 : i32
    %c0_i32_0 = arith.constant 0 : i32
    %c0_i32_1 = arith.constant 0 : i32
    return %c0_i32, %c0_i32_0 : i32, i32
  }
  func.func @transform_9(%arg0: i32) -> (i32, i32) {
    %c0_i32 = arith.constant 0 : i32
    %c0_i32_0 = arith.constant 0 : i32
    %c0_i32_1 = arith.constant 0 : i32
    return %c0_i32, %c0_i32_0 : i32, i32
  }
  func.func @transform_10(%arg0: i32) -> (i32, i32) {
    %c0_i32 = arith.constant 0 : i32
    %c0_i32_0 = arith.constant 0 : i32
    %c0_i32_1 = arith.constant 0 : i32
    return %c0_i32, %c0_i32_0 : i32, i32
  }
  func.func @transform_11(%arg0: i32) -> (i32, i32) {
    %c0_i32 = arith.constant 0 : i32
    %c0_i32_0 = arith.constant 0 : i32
    %c0_i32_1 = arith.constant 0 : i32
    return %c0_i32, %c0_i32_0 : i32, i32
  }
  func.func @transform_12(%arg0: i32) -> (i32, i32) {
    %c0_i32 = arith.constant 0 : i32
    %c0_i32_0 = arith.constant 0 : i32
    %c0_i32_1 = arith.constant 0 : i32
    return %c0_i32, %c0_i32_0 : i32, i32
  }
  func.func @transform_13(%arg0: i32) -> (i32, i32) {
    %c0_i32 = arith.constant 0 : i32
    %c0_i32_0 = arith.constant 0 : i32
    %c0_i32_1 = arith.constant 0 : i32
    return %c0_i32, %c0_i32_0 : i32, i32
  }
  func.func @transform_14(%arg0: i32) -> (i32, i32) {
    %c0_i32 = arith.constant 0 : i32
    %c0_i32_0 = arith.constant 0 : i32
    %c0_i32_1 = arith.constant 0 : i32
    return %c0_i32, %c0_i32_0 : i32, i32
  }
  func.func @transform_15(%arg0: i32) -> (i32, i32) {
    %c0_i32 = arith.constant 0 : i32
    %c0_i32_0 = arith.constant 0 : i32
    %c0_i32_1 = arith.constant 0 : i32
    return %c0_i32, %c0_i32_0 : i32, i32
  }
  func.func @transform_16(%arg0: i32) -> (i32, i32) {
    %c0_i32 = arith.constant 0 : i32
    %c0_i32_0 = arith.constant 0 : i32
    %c0_i32_1 = arith.constant 0 : i32
    return %c0_i32, %c0_i32_0 : i32, i32
  }
  func.func @transform_17(%arg0: i32) -> (i32, i32) {
    %c0_i32 = arith.constant 0 : i32
    %c0_i32_0 = arith.constant 0 : i32
    return %arg0, %c0_i32 : i32, i32
  }
}

</mosaic_0001>

<bundles_post_ra>
// kernel: tpu_custom_call.1
= control target key start
LH: loop header
LB: loop body
LE: loop exit
PB: predicated region body
PF: predicated region fallthrough
CT: control target
= control target key end

     0   :  { %s5477_s0 = inlined_call_operand.vmem [shape: f32[16,16,4], index: 0, kind: input, shape index: {}]   ;;  %s5478_s1 = inlined_call_operand.vmem [shape: f32[16,16,16], index: 1, kind: input, shape index: {}]   ;;  %s5479_s2 = inlined_call_operand.vmem [shape: f32[16,16,1], index: 2, kind: input, shape index: {}]   ;;  %s5480_s3 = inlined_call_operand.vmem [shape: f32[4,32], index: 3, kind: input, shape index: {}]   ;;  %s5481_s4 = inlined_call_operand.vmem [shape: f32[1,32], index: 4, kind: input, shape index: {}]   ;;  %s5482_s5 = inlined_call_operand.vmem [shape: f32[1,32], index: 5, kind: input, shape index: {}]   ;;  %s5483_s6 = inlined_call_operand.vmem [shape: f32[32,32], index: 6, kind: input, shape index: {}]   ;;  %s5484_s7 = inlined_call_operand.vmem [shape: f32[1,32], index: 7, kind: input, shape index: {}]   ;;  %s5485_s8 = inlined_call_operand.vmem [shape: f32[1,32], index: 8, kind: input, shape index: {}]   ;;  %s5486_s9 = inlined_call_operand.vmem [shape: f32[4,64], index: 9, kind: input, shape index: {}]   ;;  %s5487_s10 = inlined_call_operand.vmem [shape: f32[32,64], index: 10, kind: input, shape index: {}]   ;;  %s5488_s11 = inlined_call_operand.vmem [shape: f32[32,64], index: 11, kind: input, shape index: {}]   ;;  %s5489_s12 = inlined_call_operand.vmem [shape: f32[1,64], index: 12, kind: input, shape index: {}]   ;;  %s5490_s13 = inlined_call_operand.vmem [shape: f32[32,32], index: 13, kind: input, shape index: {}]   ;;  %s5491_s14 = inlined_call_operand.vmem [shape: f32[1,32], index: 14, kind: input, shape index: {}]   ;;  %s5492_s15 = inlined_call_operand.vmem [shape: f32[32,2], index: 15, kind: input, shape index: {}]   ;;  %s5493_s16 = inlined_call_operand.vmem [shape: f32[1,2], index: 16, kind: input, shape index: {}]   ;;  %s5494_s17 = inlined_call_operand.hbm [shape: f32[16,128], index: 17, kind: output, shape index: {}]  }
   0x1   :  { %5496 = sst [smem:[#allocation6_spill]] %s5477_s0 }
   0x2   :  { %5497 = sst [smem:[#allocation7_spill]] %s5478_s1 }
   0x3   :  { %5498 = sst [smem:[#allocation8_spill]] %s5479_s2 }
   0x4   :  { %5499 = sst [smem:[#allocation9_spill]] %s5480_s3 }
   0x5   :  { %5500 = sst [smem:[#allocation10_spill]] %s5486_s9 }
   0x6   :  { %22 = vsyncpa [#allocation3], 0 }
   0x7   :  { %24 = vsyncpa [#allocation3 + $0x1], 0  ;;  %s4778_s24 = smov 0   ;;  %s4780_s25 = smov 0  }
   0x8   :  { %s4782_s26 = smov 0   ;;  %s4784_s27 = smov 0  }
   0x9 LB: > { %s4799_s28 = sadd.s32 4294967295, %s4679_s27   ;;  %s3629_s29 = sadd.s32 4294967294, %s4679_s27   ;;  %s4679_s27 = sphi %s4784_s27, %s5514_s27   ;;  %s4675_s26 = sphi %s4782_s26, %s5513_s26   ;;  %s4671_s25 = sphi %s4780_s25, %s5512_s25   ;;  %s4667_s24 = sphi %s4778_s24, %s5511_s24  }
   0xa   : > { %s4803_s0 = sadd.s32 1, %s4679_s27   ;;  %s409_s30 = sadd.s32 1, %s4675_s26 }
   0xb   : > { %s406_s18 = ssub.s32 %s4679_s27, %s4803_s0  ;;  %p419_p0 = scmp.ne.s32.totalorder %s4675_s26, %s4671_s25 }
   0xc   : > { %p407_p1 = scmp.eq.s32.totalorder %s406_s18, 0  ;;  %p420_p2 = scmp.eq.s32.totalorder %s4799_s28, 1 }
   0xd   : > { %p425_p3 = scmp.ne.s32.totalorder %s4671_s25, %s4667_s24  ;;  %p426_p4 = scmp.eq.s32.totalorder %s3629_s29, 1 }
   0xe   : > { %s4814_s19 = scalar_select %p407_p1, %s4675_s26, %s409_s30  }
   0xf   : > { %p4816_p5 = por %p420_p2, %p419_p0  ;;  %p4820_p6 = por %p426_p4, %p425_p3 }
  0x10   : > { %5501 = sst [smem:[#allocation5_spill]] %s4814_s19  ;;  %p3632_p7 = scmp.ge.s32.totalorder %s4679_s27, 1 }
  0x11   : > { %p516_p8 = scmp.lt.s32.totalorder %s4679_s27, 3 }
  0x13   : > { %p517_p9 = pnand %p3632_p7, %p516_p8 }
  0x14   : > { %s5504_s9 = sld [smem:[#allocation10_spill]] (!%p517_p9)  ;;  %vm701_vm0 = vcmask (!%p517_p9), 1043456   ;;  %s3634_s23 = sshll.u32 (!%p517_p9), %s4799_s28, 3  ;;  %vm652_vm1 = vcmask (!%p517_p9), 31744   ;;  %vm1028_vm2 = vcmask (!%p517_p9), 130048   ;;  %v4681_v20 = vmov (!%p517_p9), 0  }
  0x15   : > { %520 = sbr.rel (%p517_p9) target bundleno = 1941 (0x795), region = 88  ;;  %p582_p10 = scmp.lt.s32.totalorder (!%p517_p9), %s3634_s23, 15  ;;  %4435 = vset.pattern.permute.xlu0 (!%p517_p9), %v4681_v20  ;;  %4436 = vset.pattern.permute.xlu1 (!%p517_p9), %v4681_v20  ;;  %v4944_v41 = vld [vmem:[%s5481_s4] ss:$0 sm:$0xff] (!%p517_p9)  ;;  %vm1816_vm3 = vcmask (!%p517_p9), 261120   ;;  %vm4684_vm4 = vmmov (!%p517_p9), 0  }
  0x16   : > { %s5505_s3 = sld [smem:[#allocation9_spill]] (!%p517_p9)  ;;  %s5507_s29 = sld [smem:[#allocation7_spill]] (!%p517_p9)  ;;  %vm3341_vm5 = vcmask (!%p517_p9), 1041409   ;;  %vm3343_vm6 = vcmask (!%p517_p9), 1042434   ;;  %vm3345_vm7 = vcmask (!%p517_p9), 1043459   ;;  %vm3347_vm8 = vcmask (!%p517_p9), 1044484  }
  0x17   : > { %s5508_s2 = sld [smem:[#allocation8_spill]] (!%p517_p9)  ;;  %vm3349_vm9 = vcmask (!%p517_p9), 1045509   ;;  %vm3351_vm10 = vcmask (!%p517_p9), 1046534   ;;  %vm3353_vm11 = vcmask (!%p517_p9), 1047559   ;;  %s3784_s21 = sshll.u32 (!%p517_p9), %s4799_s28, 7  ;;  %vm3528_vm13 = vcmask (!%p517_p9), 277760  }
  0x18   : > { %vm3530_vm14 = vcmask (!%p517_p9), 1047824  }
  0x1a   : > { %v651_v0 = vld [vmem:[%s5504_s9] sm:$0xf] (!%p517_p9)  ;;  %s5506_s9 = sld [smem:[#allocation6_spill]] (!%p517_p9) }
  0x1b   : > { %4340 = vmatprep.subr.msk.mxu1 (!%p517_p9), %vm701_vm0, %v651_v0  ;;  %3958 = vmatprep.subr.msk.mxu0 (!%p517_p9), %vm701_vm0, %v651_v0 }
  0x1c   : > { %v872_v1 = vld [vmem:[%s5505_s3] sm:$0xf]  ;;  %4341 = vmatpush3.msk.msra.mxu1 %vm701_vm0, %v651_v0  ;;  %3959 = vmatpush3.msk.msra.mxu0 %vm701_vm0, %v651_v0  ;;  %s5516_s23 = smov (!%p582_p10, %s3634_s23), 15 }
  0x1d   : > { %3984 = vmatprep.subr.msk.mxu1 %vm701_vm0, %v872_v1  ;;  %s4838_s18 = sshll.u32 %s5516_s23, 4  ;;  %s5509_s23 = sand.u32 1, %s4671_s25  }
  0x1e   : > { %s4915_s22 = scalar_lea.vmem %s5508_s2, %s4838_s18  ;;  %s4682_s2 = smov 96  }
  0x1f   : > { %v634_v21 = vld [vmem:[%s4915_s22] sm:$0xff]  ;;  %v636_v22 = vld [vmem:[%s4915_s22 + $0x10] sm:$0xff]  ;;  %v635_v23 = vld [vmem:[%s4915_s22 + $0x8] sm:$0xff] }
  0x20   : > { %s4844_s19 = scalar_lea.vmem %s5506_s9, %s4838_s18  ;;  %1718 = vperm.xlu0 %4435, %v634_v21   ;;  %1728 = vperm.xlu1 %4436, %v636_v22   ;;  %v637_v24 = vld [vmem:[%s4915_s22 + $0x18] sm:$0xff]  ;;  %v638_v25 = vld [vmem:[%s4915_s22 + $0x20] sm:$0xff]  ;;  %v639_v26 = vld [vmem:[%s4915_s22 + $0x28] sm:$0xff] }
  0x21   : > { %v614_v2 = vld [vmem:[%s4844_s19 + $0x60] sm:$0xff]  ;;  %v615_v3 = vld [vmem:[%s4844_s19 + $0x68] sm:$0xff]  ;;  %v616_v4 = vld [vmem:[%s4844_s19 + $0x70] sm:$0xff] }
  0x22   : > { %3978 = vmatprep.mubr.msk.f32.mxu1 %vm652_vm1, %v614_v2  ;;  %v602_v5 = vld [vmem:[%s4844_s19] sm:$0xff]  ;;  %v617_v6 = vld [vmem:[%s4844_s19 + $0x78] sm:$0xff]  ;;  %v603_v7 = vld [vmem:[%s4844_s19 + $0x8] sm:$0xff] }
  0x23   : > { %3979 = vmatmul.mubr.msk.f32.vlgmr.msra.gmra.mrb[0].mxu1 %vm652_vm1, %v615_v3  ;;  %3960 = vmatprep.mubr.msk.f32.mxu0 %vm652_vm1, %v602_v5  ;;  %v604_v8 = vld [vmem:[%s4844_s19 + $0x10] sm:$0xff]  ;;  %v605_v9 = vld [vmem:[%s4844_s19 + $0x18] sm:$0xff]  ;;  %v606_v10 = vld [vmem:[%s4844_s19 + $0x20] sm:$0xff] }
  0x24   : > { %3981 = vmatprep.mubr.msk.f32.mxu1 %vm652_vm1, %v616_v4  ;;  %3985 = vmatpush3.msk.msra.mxu1 %vm701_vm0, %v872_v1  ;;  %v607_v11 = vld [vmem:[%s4844_s19 + $0x28] sm:$0xff]  ;;  %v608_v12 = vld [vmem:[%s4844_s19 + $0x30] sm:$0xff]  ;;  %v609_v13 = vld [vmem:[%s4844_s19 + $0x38] sm:$0xff] }
  0x25   : > { %3961 = vmatmul.mubr.msk.f32.vlgmr.msra.gmra.mrb[0].mxu0 %vm652_vm1, %v603_v7  ;;  %v610_v14 = vld [vmem:[%s4844_s19 + $0x40] sm:$0xff]  ;;  %v611_v15 = vld [vmem:[%s4844_s19 + $0x48] sm:$0xff]  ;;  %v612_v16 = vld [vmem:[%s4844_s19 + $0x50] sm:$0xff]  ;;  %1723 = vperm.xlu0 %4435, %v635_v23  }
  0x26   : > { %3963 = vmatprep.mubr.msk.f32.mxu0 %vm652_vm1, %v604_v8  ;;  %v613_v17 = vld [vmem:[%s4844_s19 + $0x58] sm:$0xff]  ;;  %s4899_s19 = scalar_lea.vmem %s5507_s29, %s4838_s18  ;;  %1733 = vperm.xlu1 %4436, %v637_v24   ;;  %v640_v27 = vld [vmem:[%s4915_s22 + $0x30] sm:$0xff]  ;;  %v642_v29 = vld [vmem:[%s4915_s22 + $0x40] sm:$0xff] }
  0x27   : > { %3982 = vmatmul.mubr.msk.f32.gmra.mrb[2].mxu1 %vm652_vm1, %v617_v6  ;;  %v4902_v18 = vld [vmem:[%s4899_s19] sm:$0xff]  ;;  %v4907_v19 = vld [vmem:[%s4899_s19 + $0x10] sm:$0xff]  ;;  %v641_v28 = vld [vmem:[%s4915_s22 + $0x38] sm:$0xff] }
  0x28   : > { %3986 = vmatprep.mubr.msk.f32.mxu1 %vm652_vm1, %v602_v5  ;;  %v643_v30 = vld [vmem:[%s4915_s22 + $0x48] sm:$0xff]  ;;  %v644_v31 = vld [vmem:[%s4915_s22 + $0x50] sm:$0xff]  ;;  %v645_v32 = vld [vmem:[%s4915_s22 + $0x58] sm:$0xff] }
  0x29   : > { %3964 = vmatmul.mubr.msk.f32.gmra.mrb[2].mxu0 %vm652_vm1, %v605_v9  ;;  %1738 = vperm.xlu0 %4435, %v638_v25   ;;  %v646_v33 = vld [vmem:[%s4915_s22 + $0x60] sm:$0xff]  ;;  %v647_v34 = vld [vmem:[%s4915_s22 + $0x68] sm:$0xff]  ;;  %v648_v35 = vld [vmem:[%s4915_s22 + $0x70] sm:$0xff] }
  0x2a   : > { %3966 = vmatprep.mubr.msk.f32.mxu0 %vm652_vm1, %v606_v10  ;;  %1743 = vperm.xlu1 %4436, %v639_v26   ;;  %v649_v36 = vld [vmem:[%s4915_s22 + $0x78] sm:$0xff]  ;;  %v4951_v51 = vld [vmem:[%s4899_s19 + $0x8] sm:$0xff]  ;;  %v4954_v54 = vld [vmem:[%s4899_s19 + $0x20] sm:$0xff] }
  0x2b   : > { %3987 = vmatmul.mubr.msk.f32.vlgmr.msra.gmra.mrb[4].mxu1 %vm652_vm1, %v603_v7  ;;  %v4961_v58 = vld [vmem:[%s4899_s19 + $0x18] sm:$0xff]  ;;  %v4966_v61 = vld [vmem:[%s4899_s19 + $0x30] sm:$0xff]  ;;  %v4973_v1 = vld [vmem:[%s4899_s19 + $0x28] sm:$0xff] }
  0x2c   : > { %3989 = vmatprep.mubr.msk.f32.mxu1 %vm652_vm1, %v604_v8  ;;  %v4985_v8 = vld [vmem:[%s4899_s19 + $0x38] sm:$0xff]  ;;  %v5002_v20 = vld [vmem:[%s4899_s19 + $0x60] sm:$0xff] }
  0x2d   : > { %3967 = vmatmul.mubr.msk.f32.gmra.mrb[4].mxu0 %vm652_vm1, %v607_v11  ;;  %1748 = vperm.xlu0 %4435, %v640_v27   ;;  %v5009_v24 = vld [vmem:[%s4899_s19 + $0x58] sm:$0xff]  ;;  %v5014_v27 = vld [vmem:[%s4899_s19 + $0x70] sm:$0xff] }
  0x2e   : > { %3969 = vmatprep.mubr.msk.f32.mxu0 %vm652_vm1, %v608_v12  ;;  %1753 = vperm.xlu1 %4436, %v641_v28  }
  0x2f   : > { %3990 = vmatmul.mubr.msk.f32.gmra.mrb[6].mxu1 %vm652_vm1, %v605_v9 }
  0x30   : > { %3992 = vmatprep.mubr.msk.f32.mxu1 %vm652_vm1, %v606_v10 }
  0x31   : > { %3970 = vmatmul.mubr.msk.f32.gmra.mrb[6].mxu0 %vm652_vm1, %v609_v13  ;;  %1758 = vperm.xlu0 %4435, %v642_v29  }
  0x32   : > { %3972 = vmatprep.mubr.msk.f32.mxu0 %vm652_vm1, %v610_v14  ;;  %1763 = vperm.xlu1 %4436, %v643_v30  }
  0x33   : > { %3993 = vmatmul.mubr.msk.f32.gmra.mrb[8].mxu1 %vm652_vm1, %v607_v11  ;;  %v4990_v11 = vld [vmem:[%s4899_s19 + $0x50] sm:$0xff] }
  0x34   : > { %3995 = vmatprep.mubr.msk.f32.mxu1 %vm652_vm1, %v608_v12 }
  0x35   : > { %3973 = vmatmul.mubr.msk.f32.gmra.mrb[8].mxu0 %vm652_vm1, %v611_v15  ;;  %1768 = vperm.xlu0 %4435, %v644_v31   ;;  %v5021_v31 = vld [vmem:[%s4899_s19 + $0x68] sm:$0xff] }
  0x36   : > { %3975 = vmatprep.mubr.msk.f32.mxu0 %vm652_vm1, %v612_v16  ;;  %1773 = vperm.xlu1 %4436, %v645_v32  }
  0x37   : > { %3996 = vmatmul.mubr.msk.f32.gmra.mrb[10].mxu1 %vm652_vm1, %v609_v13 }
  0x38   : > { %3998 = vmatprep.mubr.msk.f32.mxu1 %vm652_vm1, %v610_v14 }
  0x39   : > { %3976 = vmatmul.mubr.msk.f32.gmra.mrb[10].mxu0 %vm652_vm1, %v613_v17  ;;  %1778 = vperm.xlu0 %4435, %v646_v33   ;;  %v5028_v33 = vld [vmem:[%s4899_s19 + $0x78] sm:$0xff] }
  0x3a   : > { %4014 = vmatprep.mubr.msk.f32.mxu0 %vm1028_vm2, %v4902_v18  ;;  %1783 = vperm.xlu1 %4436, %v647_v34   ;;  %v1812_v34 = vld [vmem:[%s5487_s10] sm:$0xff] }
  0x3b   : > { %3999 = vmatmul.mubr.msk.f32.gmra.mrb[12].mxu1 %vm652_vm1, %v611_v15  ;;  %v4997_v15 = vld [vmem:[%s4899_s19 + $0x48] sm:$0xff] }
  0x3c   : > { %4001 = vmatprep.mubr.msk.f32.mxu1 %vm652_vm1, %v612_v16 }
  0x3d   : > { %1788 = vperm.xlu0 %4435, %v648_v35   ;;  %v1813_v35 = vld [vmem:[%s5487_s10 + $0x8] sm:$0xff] }
  0x3e   : > { %1793 = vperm.xlu1 %4436, %v649_v36   ;;  %v2026_v36 = vld [vmem:[%s5483_s6] sm:$0xff] }
  0x3f   : > { %4002 = vmatmul.mubr.msk.f32.gmra.mrb[14].mxu1 %vm652_vm1, %v613_v17 }
  0x40   : > { %4004 = vmatprep.mubr.msk.f32.mxu1 %vm652_vm1, %v614_v2 }
  0x43   : > { %4005 = vmatmul.mubr.msk.f32.gmra.mrb[16].mxu1 %vm652_vm1, %v615_v3 }
  0x44   : > { %4007 = vmatprep.mubr.msk.f32.mxu1 %vm652_vm1, %v616_v4  ;;  %v4978_v4 = vld [vmem:[%s4899_s19 + $0x40] sm:$0xff]  ;;  %s5430_s19 = scalar_lea.hbm %s5494_s17, %s3784_s21 }
  0x47   : > { %4008 = vmatmul.mubr.msk.f32.gmra.mrb[18].mxu1 %vm652_vm1, %v617_v6 }
  0x48   : > { %4021 = vmatprep.mubr.msk.f32.mxu1 %vm1028_vm2, %v4907_v19 }
  0xf6   : > { %v4933_v37 = vpop.f32.mrb[0].mxu1 }
  0xf7   : > { %v4935_v38 = vpop.f32.mrb[1].mxu1 }
  0xfa   : > { %v4937_v39 = vpop.f32.mrb[2].mxu1 }
  0xfb   : > { %v4939_v40 = vpop.f32.mrb[3].mxu1 }
  0xfe   : > { %v3988_v42 = vpop.f32.mrb[4].mxu1 }
  0xff   : > { %v955_v43 = vadd.f32 %v3988_v42, %v4944_v41  ;;  %v949_v44 = vpop.f32.mrb[5].mxu1  ;;  %v2027_v42 = vld [vmem:[%s5483_s6 + $0x8] sm:$0xff] }
 0x100   : > { %v950_v45 = vadd.f32 %v4944_v41, %v949_v44  ;;  %v1814_v44 = vld [vmem:[%s5487_s10 + $0x10] sm:$0xff] }
 0x102   : > { %v4240_v46 = vpack.c.bf16 %v955_v43, %v950_v45  ;;  %v3991_v47 = vpop.f32.mrb[6].mxu1  ;;  %v4280_v43 = vpack.c.bf16 %v2027_v42, %v2026_v36  ;;  %v1815_v45 = vld [vmem:[%s5487_s10 + $0x18] sm:$0xff] }
 0x103   : > { %v965_v48 = vadd.f32 %v3991_v47, %v4944_v41  ;;  %v959_v49 = vpop.f32.mrb[7].mxu1  ;;  %v4276_v47 = vpack.c.bf16 %v1815_v45, %v1814_v44 }
 0x104   : > { %v960_v50 = vadd.f32 %v4944_v41, %v959_v49  ;;  %4241 = vmatprep.subr.bf16.mxu0 %v4240_v46 }
 0x105   : > { %4243 = vmatpush3.bf16.msra.mxu0 %v4240_v46  ;;  %v2028_v46 = vld [vmem:[%s5483_s6 + $0x10] sm:$0xff] }
 0x106   : > { %v4244_v52 = vpack.c.bf16 %v965_v48, %v960_v50  ;;  %v3994_v53 = vpop.f32.mrb[8].mxu1  ;;  %v2029_v48 = vld [vmem:[%s5483_s6 + $0x18] sm:$0xff]  ;;  %v5059_v50 = vld [vmem:[%s5482_s5] ss:$0 sm:$0xff] }
 0x107   : > { %v975_v55 = vadd.f32 %v3994_v53, %v4944_v41  ;;  %v969_v56 = vpop.f32.mrb[9].mxu1  ;;  %v4284_v49 = vpack.c.bf16 %v2029_v48, %v2028_v46 }
 0x108   : > { %v970_v57 = vadd.f32 %v4944_v41, %v969_v56  ;;  %4015 = vmatmul.mubr.msk.f32.vlgmr.msra.gmra.mrb[12].mxu0 %vm1028_vm2, %v4951_v51  ;;  %4245 = vmatprep.subr.bf16.mxu1 %v4244_v52 }
 0x109   : > { %4247 = vmatpush3.bf16.msra.mxu1 %v4244_v52  ;;  %4028 = vmatprep.mubr.msk.f32.mxu0 %vm1028_vm2, %v4954_v54  ;;  %v5061_v52 = vpop.permute.xlu0 %1718 }
 0x10a   : > { %v4248_v59 = vpack.c.bf16 %v975_v55, %v970_v57  ;;  %v3997_v60 = vpop.f32.mrb[10].mxu1  ;;  %v5063_v55 = vpop.permute.xlu1 %1728 }
 0x10b   : > { %v985_v62 = vadd.f32 %v3997_v60, %v4944_v41  ;;  %v979_v63 = vpop.f32.mrb[11].mxu1 }
 0x10c   : > { %v980_v0 = vadd.f32 %v4944_v41, %v979_v63  ;;  %4022 = vmatmul.mubr.msk.f32.vlgmr.msra.gmra.mrb[20].mxu1 %vm1028_vm2, %v4961_v58  ;;  %4249 = vmatprep.subr.bf16.mxu0 %v4248_v59 }
 0x10d   : > { %4251 = vmatpush3.bf16.msra.mxu0 %v4248_v59  ;;  %4035 = vmatprep.mubr.msk.f32.mxu1 %vm1028_vm2, %v4966_v61 }
 0x10e   : > { %v4252_v2 = vpack.c.bf16 %v985_v62, %v980_v0  ;;  %v4000_v3 = vpop.f32.mrb[12].mxu1  ;;  %v5068_v0 = vpop.permute.xlu0 %1723 }
 0x10f   : > { %v995_v5 = vadd.f32 %v4000_v3, %v4944_v41  ;;  %v989_v6 = vpop.f32.mrb[13].mxu1  ;;  %v5071_v3 = vpop.permute.xlu1 %1733 }
 0x110   : > { %v990_v7 = vadd.f32 %v4944_v41, %v989_v6  ;;  %4029 = vmatmul.mubr.msk.f32.vlgmr.msra.gmra.mrb[14].mxu0 %vm1028_vm2, %v4973_v1  ;;  %4253 = vmatprep.subr.bf16.mxu1 %v4252_v2 }
 0x111   : > { %4255 = vmatpush3.bf16.msra.mxu1 %v4252_v2  ;;  %4042 = vmatprep.mubr.msk.f32.mxu0 %vm1028_vm2, %v4978_v4 }
 0x112   : > { %v4256_v9 = vpack.c.bf16 %v995_v5, %v990_v7  ;;  %v4003_v10 = vpop.f32.mrb[14].mxu1 }
 0x113   : > { %v1005_v12 = vadd.f32 %v4003_v10, %v4944_v41  ;;  %v999_v13 = vpop.f32.mrb[15].mxu1  ;;  %v5075_v10 = vpop.permute.xlu0 %1738 }
 0x114   : > { %v1000_v14 = vadd.f32 %v4944_v41, %v999_v13  ;;  %4036 = vmatmul.mubr.msk.f32.vlgmr.msra.gmra.mrb[22].mxu1 %vm1028_vm2, %v4985_v8  ;;  %4257 = vmatprep.subr.bf16.mxu0 %v4256_v9 }
 0x115   : > { %4259 = vmatpush3.bf16.msra.mxu0 %v4256_v9  ;;  %4049 = vmatprep.mubr.msk.f32.mxu1 %vm1028_vm2, %v4990_v11 }
 0x116   : > { %v4260_v16 = vpack.c.bf16 %v1005_v12, %v1000_v14  ;;  %v4006_v17 = vpop.f32.mrb[16].mxu1  ;;  %v5077_v14 = vpop.permute.xlu1 %1743 }
 0x117   : > { %v1015_v21 = vadd.f32 %v4006_v17, %v4944_v41  ;;  %v1009_v22 = vpop.f32.mrb[17].mxu1 }
 0x118   : > { %v1010_v23 = vadd.f32 %v4944_v41, %v1009_v22  ;;  %4043 = vmatmul.mubr.msk.f32.vlgmr.msra.gmra.mrb[16].mxu0 %vm1028_vm2, %v4997_v15  ;;  %4261 = vmatprep.subr.bf16.mxu1 %v4260_v16 }
 0x119   : > { %4263 = vmatpush3.bf16.msra.mxu1 %v4260_v16  ;;  %4056 = vmatprep.mubr.msk.f32.mxu0 %vm1028_vm2, %v5002_v20 }
 0x11a   : > { %v4264_v25 = vpack.c.bf16 %v1015_v21, %v1010_v23  ;;  %v4009_v26 = vpop.f32.mrb[18].mxu1  ;;  %v5091_v36 = vpop.permute.xlu1 %1753 }
 0x11b   : > { %v1025_v28 = vadd.f32 %v4009_v26, %v4944_v41  ;;  %v1019_v29 = vpop.f32.mrb[19].mxu1 }
 0x11c   : > { %v1020_v30 = vadd.f32 %v4944_v41, %v1019_v29  ;;  %4050 = vmatmul.mubr.msk.f32.vlgmr.msra.gmra.mrb[24].mxu1 %vm1028_vm2, %v5009_v24  ;;  %4265 = vmatprep.subr.bf16.mxu0 %v4264_v25  ;;  %v4272_v41 = vpack.c.bf16 %v1813_v35, %v1812_v34  ;;  %v5086_v34 = vpop.permute.xlu0 %1748 }
 0x11d   : > { %4267 = vmatpush3.bf16.msra.mxu0 %v4264_v25  ;;  %4063 = vmatprep.mubr.msk.f32.mxu1 %vm1028_vm2, %v5014_v27 }
 0x11e   : > { %v4268_v32 = vpack.c.bf16 %v1025_v28, %v1020_v30  ;;  %4273 = vmatprep.subr.bf16.mxu0 %v4272_v41 }
 0x120   : > { %4057 = vmatmul.mubr.msk.f32.vlgmr.msra.gmra.mrb[18].mxu0 %vm1028_vm2, %v5021_v31  ;;  %4269 = vmatprep.subr.bf16.mxu1 %v4268_v32 }
 0x121   : > { %4271 = vmatpush3.bf16.msra.mxu1 %v4268_v32  ;;  %4275 = vmatpush3.bf16.msra.mxu0 %v4272_v41 }
 0x122   : > { %4281 = vmatprep.subr.bf16.mxu1 %v4280_v43  ;;  %4277 = vmatprep.subr.bf16.mxu0 %v4276_v47 }
 0x124   : > { %4064 = vmatmul.mubr.msk.f32.vlgmr.msra.gmra.mrb[26].mxu1 %vm1028_vm2, %v5028_v33 }
 0x125   : > { %4283 = vmatpush3.bf16.msra.mxu1 %v4280_v43  ;;  %4279 = vmatpush3.bf16.msra.mxu0 %v4276_v47 }
 0x126   : > { %4285 = vmatprep.subr.bf16.mxu1 %v4284_v49 }
 0x129   : > { %4287 = vmatpush3.bf16.msra.mxu1 %v4284_v49 }
 0x1db   : > { %v4016_v53 = vpop.f32.mrb[12].mxu0 }
 0x1dc   : > { %v1685_v56 = vadd.f32 %v4016_v53, %v5059_v50  ;;  %v1101_v57 = vpop.f32.mrb[13].mxu0  ;;  %v5102_v53 = vpop.permute.xlu0 %1758 }
 0x1dd   : > { %v1684_v59 = vadd.f32 %v5059_v50, %v1101_v57 }
 0x1de   : > { %4437 = vtanh.f32 %v1685_v56 }
 0x1df   : > { %4439 = vtanh.f32 %v1684_v59  ;;  %v4023_v60 = vpop.f32.mrb[20].mxu1 }
 0x1e0   : > { %v1687_v62 = vadd.f32 %v4023_v60, %v5059_v50  ;;  %v1182_v63 = vpop.f32.mrb[21].mxu1  ;;  %v5105_v60 = vpop.permute.xlu1 %1763 }
 0x1e1   : > { %v1686_v2 = vadd.f32 %v5059_v50, %v1182_v63 }
 0x1e2   : > { %4441 = vtanh.f32 %v1687_v62 }
 0x1e3   : > { %4443 = vtanh.f32 %v1686_v2  ;;  %v4030_v5 = vpop.f32.mrb[14].mxu0 }
 0x1e4   : > { %v1689_v6 = vadd.f32 %v4030_v5, %v5059_v50  ;;  %v1263_v7 = vpop.f32.mrb[15].mxu0 }
 0x1e5   : > { %v1688_v9 = vadd.f32 %v5059_v50, %v1263_v7 }
 0x1e6   : > { %4445 = vtanh.f32 %v1689_v6 }
 0x1e7   : > { %4447 = vtanh.f32 %v1688_v9  ;;  %v4037_v12 = vpop.f32.mrb[22].mxu1 }
 0x1e8   : > { %v4438_v13 = vpop.eup %4437  ;;  %v1691_v16 = vadd.f32 %v4037_v12, %v5059_v50  ;;  %v1344_v17 = vpop.f32.mrb[23].mxu1 }
 0x1e9   : > { %v4440_v21 = vpop.eup %4439  ;;  %v1690_v22 = vadd.f32 %v5059_v50, %v1344_v17  ;;  %v1797_v26 = vmul.f32 %v4438_v13, %v5068_v0 }
 0x1ea   : > { %4449 = vtanh.f32 %v1691_v16  ;;  %v1796_v23 = vmul.f32 %v4440_v21, %v5061_v52  ;;  %v5118_v21 = vpop.permute.xlu0 %1768 }
 0x1eb   : > { %4451 = vtanh.f32 %v1690_v22  ;;  %v4044_v25 = vpop.f32.mrb[16].mxu0 }
 0x1ec   : > { %v4442_v28 = vpop.eup %4441  ;;  %v1693_v29 = vadd.f32 %v4044_v25, %v5059_v50  ;;  %v1425_v30 = vpop.f32.mrb[17].mxu0  ;;  %4074 = vmatprep.mubr.msk.f32.mxu0 %vm1816_vm3, %v1796_v23  ;;  %4106 = vmatprep.mubr.msk.f32.mxu1 %vm1816_vm3, %v1796_v23 }
 0x1ed   : > { %v4444_v32 = vpop.eup %4443  ;;  %v1692_v35 = vadd.f32 %v5059_v50, %v1425_v30  ;;  %4075 = vmatmul.mubr.msk.f32.vlgmr.msra.gmra.mrb[0].mxu0 %vm1816_vm3, %v1797_v26  ;;  %4107 = vmatmul.mubr.msk.f32.vlgmr.msra.gmra.mrb[28].mxu1 %vm1816_vm3, %v1797_v26  ;;  %v1799_v43 = vmul.f32 %v4442_v28, %v5071_v3  ;;  %v5123_v23 = vpop.permute.xlu1 %1773 }
 0x1ee   : > { %4453 = vtanh.f32 %v1693_v29  ;;  %v1798_v41 = vmul.f32 %v4444_v32, %v5063_v55  ;;  %v5132_v30 = vpop.permute.xlu0 %1778 }
 0x1ef   : > { %4455 = vtanh.f32 %v1692_v35  ;;  %v4051_v42 = vpop.f32.mrb[24].mxu1 }
 0x1f0   : > { %v4446_v44 = vpop.eup %4445  ;;  %v1695_v45 = vadd.f32 %v4051_v42, %v5059_v50  ;;  %v1506_v46 = vpop.f32.mrb[25].mxu1  ;;  %4077 = vmatprep.mubr.msk.f32.mxu0 %vm1816_vm3, %v1798_v41  ;;  %4109 = vmatprep.mubr.msk.f32.mxu1 %vm1816_vm3, %v1798_v41 }
 0x1f1   : > { %v4448_v47 = vpop.eup %4447  ;;  %v1694_v48 = vadd.f32 %v5059_v50, %v1506_v46  ;;  %4078 = vmatmul.mubr.msk.f32.gmra.mrb[2].mxu0 %vm1816_vm3, %v1799_v43  ;;  %4110 = vmatmul.mubr.msk.f32.gmra.mrb[30].mxu1 %vm1816_vm3, %v1799_v43  ;;  %v1801_v57 = vmul.f32 %v4446_v44, %v5077_v14  ;;  %v5135_v41 = vpop.permute.xlu1 %1783 }
 0x1f2   : > { %4457 = vtanh.f32 %v1695_v45  ;;  %v1800_v49 = vmul.f32 %v4448_v47, %v5075_v10  ;;  %v5145_v47 = vpop.permute.xlu0 %1788 }
 0x1f3   : > { %4459 = vtanh.f32 %v1694_v48  ;;  %v4058_v56 = vpop.f32.mrb[18].mxu0 }
 0x1f4   : > { %v4450_v59 = vpop.eup %4449  ;;  %v1697_v62 = vadd.f32 %v4058_v56, %v5059_v50  ;;  %v1587_v63 = vpop.f32.mrb[19].mxu0  ;;  %4080 = vmatprep.mubr.msk.f32.mxu0 %vm1816_vm3, %v1800_v49  ;;  %4112 = vmatprep.mubr.msk.f32.mxu1 %vm1816_vm3, %v1800_v49 }
 0x1f5   : > { %v4452_v2 = vpop.eup %4451  ;;  %v1696_v5 = vadd.f32 %v5059_v50, %v1587_v63  ;;  %4081 = vmatmul.mubr.msk.f32.gmra.mrb[4].mxu0 %vm1816_vm3, %v1801_v57  ;;  %4113 = vmatmul.mubr.msk.f32.gmra.mrb[32].mxu1 %vm1816_vm3, %v1801_v57  ;;  %v1803_v9 = vmul.f32 %v4450_v59, %v5091_v36  ;;  %v5149_v48 = vpop.permute.xlu1 %1793  ;;  %v3712_v57 = vld [vmem:[%s5484_s7] ss:$0 sm:$0xff] }
 0x1f6   : > { %4461 = vtanh.f32 %v1697_v62  ;;  %v1802_v6 = vmul.f32 %v4452_v2, %v5086_v34 }
 0x1f7   : > { %4463 = vtanh.f32 %v1696_v5  ;;  %v4065_v7 = vpop.f32.mrb[26].mxu1 }
 0x1f8   : > { %v4454_v12 = vpop.eup %4453  ;;  %v1699_v13 = vadd.f32 %v4065_v7, %v5059_v50  ;;  %v1668_v16 = vpop.f32.mrb[27].mxu1  ;;  %4083 = vmatprep.mubr.msk.f32.mxu0 %vm1816_vm3, %v1802_v6  ;;  %4115 = vmatprep.mubr.msk.f32.mxu1 %vm1816_vm3, %v1802_v6 }
 0x1f9   : > { %v4456_v17 = vpop.eup %4455  ;;  %v1698_v22 = vadd.f32 %v5059_v50, %v1668_v16  ;;  %4084 = vmatmul.mubr.msk.f32.gmra.mrb[6].mxu0 %vm1816_vm3, %v1803_v9  ;;  %4116 = vmatmul.mubr.msk.f32.gmra.mrb[34].mxu1 %vm1816_vm3, %v1803_v9  ;;  %v1805_v26 = vmul.f32 %v4454_v12, %v5105_v60 }
 0x1fa   : > { %4465 = vtanh.f32 %v1699_v13  ;;  %v1804_v25 = vmul.f32 %v4456_v17, %v5102_v53 }
 0x1fb   : > { %4467 = vtanh.f32 %v1698_v22 }
 0x1fc   : > { %v4458_v28 = vpop.eup %4457  ;;  %4086 = vmatprep.mubr.msk.f32.mxu0 %vm1816_vm3, %v1804_v25  ;;  %4118 = vmatprep.mubr.msk.f32.mxu1 %vm1816_vm3, %v1804_v25 }
 0x1fd   : > { %v4460_v29 = vpop.eup %4459  ;;  %4087 = vmatmul.mubr.msk.f32.gmra.mrb[8].mxu0 %vm1816_vm3, %v1805_v26  ;;  %4119 = vmatmul.mubr.msk.f32.gmra.mrb[36].mxu1 %vm1816_vm3, %v1805_v26  ;;  %v1807_v32 = vmul.f32 %v4458_v28, %v5123_v23 }
 0x1fe   : > { %v1806_v50 = vmul.f32 %v4460_v29, %v5118_v21 }
 0x200   : > { %v4462_v35 = vpop.eup %4461  ;;  %4089 = vmatprep.mubr.msk.f32.mxu0 %vm1816_vm3, %v1806_v50  ;;  %4121 = vmatprep.mubr.msk.f32.mxu1 %vm1816_vm3, %v1806_v50 }
 0x201   : > { %v4464_v42 = vpop.eup %4463  ;;  %4090 = vmatmul.mubr.msk.f32.gmra.mrb[10].mxu0 %vm1816_vm3, %v1807_v32  ;;  %4122 = vmatmul.mubr.msk.f32.gmra.mrb[38].mxu1 %vm1816_vm3, %v1807_v32  ;;  %v1809_v44 = vmul.f32 %v4462_v35, %v5135_v41 }
 0x202   : > { %v1808_v43 = vmul.f32 %v4464_v42, %v5132_v30 }
 0x204   : > { %v4466_v45 = vpop.eup %4465  ;;  %4092 = vmatprep.mubr.msk.f32.mxu0 %vm1816_vm3, %v1808_v43  ;;  %4124 = vmatprep.mubr.msk.f32.mxu1 %vm1816_vm3, %v1808_v43 }
 0x205   : > { %v4468_v46 = vpop.eup %4467  ;;  %4093 = vmatmul.mubr.msk.f32.gmra.mrb[20].mxu0 %vm1816_vm3, %v1809_v44  ;;  %4125 = vmatmul.mubr.msk.f32.gmra.mrb[40].mxu1 %vm1816_vm3, %v1809_v44  ;;  %v1811_v56 = vmul.f32 %v4466_v45, %v5149_v48 }
 0x206   : > { %v1810_v49 = vmul.f32 %v4468_v46, %v5145_v47 }
 0x208   : > { %4095 = vmatprep.mubr.msk.f32.mxu0 %vm1816_vm3, %v1810_v49  ;;  %4127 = vmatprep.mubr.msk.f32.mxu1 %vm1816_vm3, %v1810_v49 }
 0x209   : > { %4096 = vmatmul.mubr.msk.f32.gmra.mrb[22].mxu0 %vm1816_vm3, %v1811_v56  ;;  %4128 = vmatmul.mubr.msk.f32.gmra.mrb[42].mxu1 %vm1816_vm3, %v1811_v56 }
 0x20a   : > { %4134 = vmatprep.mubr.msk.f32.mxu0 %vm1028_vm2, %v4902_v18  ;;  %4141 = vmatprep.mubr.msk.f32.mxu1 %vm1028_vm2, %v4907_v19 }
 0x2c0   : > { %v4108_v59 = vpop.f32.mrb[28].mxu1 }
 0x2c1   : > { %v2109_v62 = vadd.f32 %v4108_v59, %v3712_v57  ;;  %v2103_v63 = vpop.f32.mrb[29].mxu1 }
 0x2c2   : > { %v2104_v2 = vadd.f32 %v3712_v57, %v2103_v63 }
 0x2c4   : > { %v4288_v5 = vpack.c.bf16 %v2109_v62, %v2104_v2  ;;  %v4111_v6 = vpop.f32.mrb[30].mxu1 }
 0x2c5   : > { %v2119_v7 = vadd.f32 %v4111_v6, %v3712_v57  ;;  %v2113_v9 = vpop.f32.mrb[31].mxu1 }
 0x2c6   : > { %v2114_v12 = vadd.f32 %v3712_v57, %v2113_v9  ;;  %4289 = vmatprep.subr.bf16.mxu0 %v4288_v5 }
 0x2c7   : > { %4291 = vmatpush3.bf16.msra.mxu0 %v4288_v5 }
 0x2c8   : > { %v4292_v13 = vpack.c.bf16 %v2119_v7, %v2114_v12  ;;  %v4114_v18 = vpop.f32.mrb[32].mxu1 }
 0x2c9   : > { %v2129_v16 = vadd.f32 %v4114_v18, %v3712_v57  ;;  %v2123_v17 = vpop.f32.mrb[33].mxu1 }
 0x2ca   : > { %v2124_v19 = vadd.f32 %v3712_v57, %v2123_v17  ;;  %4135 = vmatmul.mubr.msk.f32.vlgmr.msra.gmra.mrb[24].mxu0 %vm1028_vm2, %v4951_v51  ;;  %4293 = vmatprep.subr.bf16.mxu1 %v4292_v13 }
 0x2cb   : > { %4295 = vmatpush3.bf16.msra.mxu1 %v4292_v13  ;;  %4148 = vmatprep.mubr.msk.f32.mxu0 %vm1028_vm2, %v4954_v54 }
 0x2cc   : > { %v4296_v22 = vpack.c.bf16 %v2129_v16, %v2124_v19  ;;  %v4117_v25 = vpop.f32.mrb[34].mxu1 }
 0x2cd   : > { %v2139_v26 = vadd.f32 %v4117_v25, %v3712_v57  ;;  %v2133_v28 = vpop.f32.mrb[35].mxu1 }
 0x2ce   : > { %v2134_v29 = vadd.f32 %v3712_v57, %v2133_v28  ;;  %4142 = vmatmul.mubr.msk.f32.vlgmr.msra.gmra.mrb[44].mxu1 %vm1028_vm2, %v4961_v58  ;;  %4297 = vmatprep.subr.bf16.mxu0 %v4296_v22 }
 0x2cf   : > { %4299 = vmatpush3.bf16.msra.mxu0 %v4296_v22  ;;  %4155 = vmatprep.mubr.msk.f32.mxu1 %vm1028_vm2, %v4966_v61 }
 0x2d0   : > { %v4300_v50 = vpack.c.bf16 %v2139_v26, %v2134_v29  ;;  %v4120_v51 = vpop.f32.mrb[36].mxu1 }
 0x2d1   : > { %v2149_v32 = vadd.f32 %v4120_v51, %v3712_v57  ;;  %v2143_v35 = vpop.f32.mrb[37].mxu1 }
 0x2d2   : > { %v2144_v42 = vadd.f32 %v3712_v57, %v2143_v35  ;;  %4149 = vmatmul.mubr.msk.f32.vlgmr.msra.gmra.mrb[26].mxu0 %vm1028_vm2, %v4973_v1  ;;  %4301 = vmatprep.subr.bf16.mxu1 %v4300_v50 }
 0x2d3   : > { %4303 = vmatpush3.bf16.msra.mxu1 %v4300_v50  ;;  %4162 = vmatprep.mubr.msk.f32.mxu0 %vm1028_vm2, %v4978_v4 }
 0x2d4   : > { %v4304_v54 = vpack.c.bf16 %v2149_v32, %v2144_v42  ;;  %v4123_v58 = vpop.f32.mrb[38].mxu1 }
 0x2d5   : > { %v2159_v43 = vadd.f32 %v4123_v58, %v3712_v57  ;;  %v2153_v44 = vpop.f32.mrb[39].mxu1 }
 0x2d6   : > { %v2154_v45 = vadd.f32 %v3712_v57, %v2153_v44  ;;  %4156 = vmatmul.mubr.msk.f32.vlgmr.msra.gmra.mrb[46].mxu1 %vm1028_vm2, %v4985_v8  ;;  %4305 = vmatprep.subr.bf16.mxu0 %v4304_v54 }
 0x2d7   : > { %4307 = vmatpush3.bf16.msra.mxu0 %v4304_v54  ;;  %4169 = vmatprep.mubr.msk.f32.mxu1 %vm1028_vm2, %v4990_v11 }
 0x2d8   : > { %v4308_v61 = vpack.c.bf16 %v2159_v43, %v2154_v45  ;;  %v4126_v1 = vpop.f32.mrb[40].mxu1 }
 0x2d9   : > { %v2169_v46 = vadd.f32 %v4126_v1, %v3712_v57  ;;  %v2163_v49 = vpop.f32.mrb[41].mxu1 }
 0x2da   : > { %v2164_v56 = vadd.f32 %v3712_v57, %v2163_v49  ;;  %4163 = vmatmul.mubr.msk.f32.vlgmr.msra.gmra.mrb[28].mxu0 %vm1028_vm2, %v4997_v15  ;;  %4309 = vmatprep.subr.bf16.mxu1 %v4308_v61  ;;  %v2837_v15 = vld [vmem:[%s5488_s11] sm:$0xff] }
 0x2db   : > { %4311 = vmatpush3.bf16.msra.mxu1 %v4308_v61  ;;  %4176 = vmatprep.mubr.msk.f32.mxu0 %vm1028_vm2, %v5002_v20  ;;  %v2838_v20 = vld [vmem:[%s5488_s11 + $0x8] sm:$0xff] }
 0x2dc   : > { %v4312_v4 = vpack.c.bf16 %v2169_v46, %v2164_v56  ;;  %v4129_v8 = vpop.f32.mrb[42].mxu1 }
 0x2dd   : > { %v2179_v59 = vadd.f32 %v4129_v8, %v3712_v57  ;;  %v2173_v62 = vpop.f32.mrb[43].mxu1 }
 0x2de   : > { %v2174_v63 = vadd.f32 %v3712_v57, %v2173_v62  ;;  %4170 = vmatmul.mubr.msk.f32.vlgmr.msra.gmra.mrb[48].mxu1 %vm1028_vm2, %v5009_v24  ;;  %4313 = vmatprep.subr.bf16.mxu0 %v4312_v4  ;;  %v4320_v24 = vpack.c.bf16 %v2838_v20, %v2837_v15  ;;  %v5207_v57 = vld [vmem:[%s5485_s8] ss:$0 sm:$0xff] }
 0x2df   : > { %4315 = vmatpush3.bf16.msra.mxu0 %v4312_v4  ;;  %4183 = vmatprep.mubr.msk.f32.mxu1 %vm1028_vm2, %v5014_v27  ;;  %v2839_v27 = vld [vmem:[%s5488_s11 + $0x10] sm:$0xff] }
 0x2e0   : > { %v4316_v11 = vpack.c.bf16 %v2179_v59, %v2174_v63  ;;  %4321 = vmatprep.subr.bf16.mxu0 %v4320_v24 }
 0x2e2   : > { %4177 = vmatmul.mubr.msk.f32.vlgmr.msra.gmra.mrb[30].mxu0 %vm1028_vm2, %v5021_v31  ;;  %4317 = vmatprep.subr.bf16.mxu1 %v4316_v11  ;;  %v2840_v31 = vld [vmem:[%s5488_s11 + $0x18] sm:$0xff] }
 0x2e3   : > { %4319 = vmatpush3.bf16.msra.mxu1 %v4316_v11  ;;  %4323 = vmatpush3.bf16.msra.mxu0 %v4320_v24 }
 0x2e6   : > { %4184 = vmatmul.mubr.msk.f32.vlgmr.msra.gmra.mrb[50].mxu1 %vm1028_vm2, %v5028_v33  ;;  %v4324_v33 = vpack.c.bf16 %v2840_v31, %v2839_v27 }
 0x2e8   : > { %4325 = vmatprep.subr.bf16.mxu0 %v4324_v33 }
 0x2e9   : > { %4327 = vmatpush3.bf16.msra.mxu0 %v4324_v33 }
 0x39d   : > { %v4136_v2 = vpop.f32.mrb[24].mxu0 }
 0x39e   : > { %v2790_v5 = vadd.f32 %v4136_v2, %v5207_v57  ;;  %v2248_v6 = vpop.f32.mrb[25].mxu0 }
 0x39f   : > { %v2789_v7 = vadd.f32 %v5207_v57, %v2248_v6 }
 0x3a0   : > { %4469 = vtanh.f32 %v2790_v5 }
 0x3a1   : > { %4471 = vtanh.f32 %v2789_v7  ;;  %v4143_v9 = vpop.f32.mrb[44].mxu1 }
 0x3a2   : > { %v2792_v12 = vadd.f32 %v4143_v9, %v5207_v57  ;;  %v2323_v13 = vpop.f32.mrb[45].mxu1 }
 0x3a3   : > { %v2791_v18 = vadd.f32 %v5207_v57, %v2323_v13 }
 0x3a4   : > { %4473 = vtanh.f32 %v2792_v12 }
 0x3a5   : > { %4475 = vtanh.f32 %v2791_v18  ;;  %v4150_v16 = vpop.f32.mrb[26].mxu0 }
 0x3a6   : > { %v2794_v17 = vadd.f32 %v4150_v16, %v5207_v57  ;;  %v2398_v19 = vpop.f32.mrb[27].mxu0 }
 0x3a7   : > { %v2793_v22 = vadd.f32 %v5207_v57, %v2398_v19 }
 0x3a8   : > { %4477 = vtanh.f32 %v2794_v17 }
 0x3a9   : > { %4479 = vtanh.f32 %v2793_v22  ;;  %v4157_v25 = vpop.f32.mrb[46].mxu1 }
 0x3aa   : > { %v4470_v26 = vpop.eup %4469  ;;  %v2796_v28 = vadd.f32 %v4157_v25, %v5207_v57  ;;  %v2473_v29 = vpop.f32.mrb[47].mxu1 }
 0x3ab   : > { %v4472_v50 = vpop.eup %4471  ;;  %v2795_v51 = vadd.f32 %v5207_v57, %v2473_v29  ;;  %v2822_v42 = vmul.f32 %v4470_v26, %v5068_v0 }
 0x3ac   : > { %4481 = vtanh.f32 %v2796_v28  ;;  %v2821_v32 = vmul.f32 %v4472_v50, %v5061_v52 }
 0x3ad   : > { %4483 = vtanh.f32 %v2795_v51  ;;  %v4164_v35 = vpop.f32.mrb[28].mxu0 }
 0x3ae   : > { %v4474_v54 = vpop.eup %4473  ;;  %v2798_v58 = vadd.f32 %v4164_v35, %v5207_v57  ;;  %v2548_v43 = vpop.f32.mrb[29].mxu0  ;;  %4194 = vmatprep.mubr.msk.f32.mxu0 %vm1816_vm3, %v2821_v32 }
 0x3af   : > { %v4476_v44 = vpop.eup %4475  ;;  %v2797_v45 = vadd.f32 %v5207_v57, %v2548_v43  ;;  %4195 = vmatmul.mubr.msk.f32.vlgmr.msra.gmra.mrb[0].mxu0 %vm1816_vm3, %v2822_v42  ;;  %v2824_v1 = vmul.f32 %v4474_v54, %v5071_v3 }
 0x3b0   : > { %4485 = vtanh.f32 %v2798_v58  ;;  %v2823_v61 = vmul.f32 %v4476_v44, %v5063_v55 }
 0x3b1   : > { %4487 = vtanh.f32 %v2797_v45  ;;  %v4171_v52 = vpop.f32.mrb[48].mxu1 }
 0x3b2   : > { %v4478_v46 = vpop.eup %4477  ;;  %v2800_v0 = vadd.f32 %v4171_v52, %v5207_v57  ;;  %v2623_v49 = vpop.f32.mrb[49].mxu1  ;;  %4197 = vmatprep.mubr.msk.f32.mxu0 %vm1816_vm3, %v2823_v61 }
 0x3b3   : > { %v4480_v56 = vpop.eup %4479  ;;  %v2799_v4 = vadd.f32 %v5207_v57, %v2623_v49  ;;  %4198 = vmatmul.mubr.msk.f32.gmra.mrb[2].mxu0 %vm1816_vm3, %v2824_v1  ;;  %v2826_v59 = vmul.f32 %v4478_v46, %v5077_v14 }
 0x3b4   : > { %4489 = vtanh.f32 %v2800_v0  ;;  %v2825_v8 = vmul.f32 %v4480_v56, %v5075_v10 }
 0x3b5   : > { %4491 = vtanh.f32 %v2799_v4  ;;  %v4178_v55 = vpop.f32.mrb[30].mxu0 }
 0x3b6   : > { %v4482_v62 = vpop.eup %4481  ;;  %v2802_v3 = vadd.f32 %v4178_v55, %v5207_v57  ;;  %v2698_v63 = vpop.f32.mrb[31].mxu0  ;;  %4200 = vmatprep.mubr.msk.f32.mxu0 %vm1816_vm3, %v2825_v8 }
 0x3b7   : > { %v4484_v11 = vpop.eup %4483  ;;  %v2801_v15 = vadd.f32 %v5207_v57, %v2698_v63  ;;  %4201 = vmatmul.mubr.msk.f32.gmra.mrb[4].mxu0 %vm1816_vm3, %v2826_v59  ;;  %v2828_v24 = vmul.f32 %v4482_v62, %v5091_v36 }
 0x3b8   : > { %4493 = vtanh.f32 %v2802_v3  ;;  %v2827_v20 = vmul.f32 %v4484_v11, %v5086_v34 }
 0x3b9   : > { %4495 = vtanh.f32 %v2801_v15  ;;  %v4185_v10 = vpop.f32.mrb[50].mxu1 }
 0x3ba   : > { %v4486_v27 = vpop.eup %4485  ;;  %v2804_v14 = vadd.f32 %v4185_v10, %v5207_v57  ;;  %v2773_v31 = vpop.f32.mrb[51].mxu1  ;;  %4203 = vmatprep.mubr.msk.f32.mxu0 %vm1816_vm3, %v2827_v20 }
 0x3bb   : > { %v4488_v33 = vpop.eup %4487  ;;  %v2803_v2 = vadd.f32 %v5207_v57, %v2773_v31  ;;  %4204 = vmatmul.mubr.msk.f32.gmra.mrb[6].mxu0 %vm1816_vm3, %v2828_v24  ;;  %v2830_v34 = vmul.f32 %v4486_v27, %v5105_v60 }
 0x3bc   : > { %4497 = vtanh.f32 %v2804_v14  ;;  %v2829_v5 = vmul.f32 %v4488_v33, %v5102_v53 }
 0x3bd   : > { %4499 = vtanh.f32 %v2803_v2 }
 0x3be   : > { %v4490_v6 = vpop.eup %4489  ;;  %4206 = vmatprep.mubr.msk.f32.mxu0 %vm1816_vm3, %v2829_v5 }
 0x3bf   : > { %v4492_v36 = vpop.eup %4491  ;;  %4207 = vmatmul.mubr.msk.f32.gmra.mrb[8].mxu0 %vm1816_vm3, %v2830_v34  ;;  %v2832_v9 = vmul.f32 %v4490_v6, %v5123_v23 }
 0x3c0   : > { %v2831_v7 = vmul.f32 %v4492_v36, %v5118_v21  ;;  %v3322_v36 = vld [vmem:[%s5490_s13] sm:$0xff] }
 0x3c2   : > { %v4494_v12 = vpop.eup %4493  ;;  %4209 = vmatprep.mubr.msk.f32.mxu0 %vm1816_vm3, %v2831_v7  ;;  %v3323_v7 = vld [vmem:[%s5490_s13 + $0x8] sm:$0xff] }
 0x3c3   : > { %v4496_v57 = vpop.eup %4495  ;;  %4210 = vmatmul.mubr.msk.f32.gmra.mrb[10].mxu0 %vm1816_vm3, %v2832_v9  ;;  %v2834_v60 = vmul.f32 %v4494_v12, %v5135_v41  ;;  %v3324_v9 = vld [vmem:[%s5490_s13 + $0x10] sm:$0xff]  ;;  %v4683_v12 = vmov 0.0|0.0  }
 0x3c4   : > { %v2833_v53 = vmul.f32 %v4496_v57, %v5132_v30  ;;  %v5260_v30 = vld [vmem:[%s5489_s12] ss:$0 sm:$0xff]  ;;  %4328 = vmatprep.subr.bf16.mxu1 %v4683_v12  ;;  %v4329_v57 = vpack.c.bf16 %v3323_v7, %v3322_v36 }
 0x3c5   : > { %v869_v56 = vadd.f32 %v4933_v37, %v5260_v30  ;;  %v868_v4 = vadd.f32 %v5260_v30, %v4935_v38  ;;  %v871_v37 = vadd.f32 %v4937_v39, %v5260_v30  ;;  %v870_v15 = vadd.f32 %v5260_v30, %v4939_v40 }
 0x3c6   : > { %v4498_v13 = vpop.eup %4497  ;;  %4212 = vmatprep.mubr.msk.f32.mxu0 %vm1816_vm3, %v2833_v53  ;;  %v3325_v53 = vld [vmem:[%s5490_s13 + $0x18] sm:$0xff]  ;;  %4330 = vmatpush3.bf16.msra.mxu1 %v4329_v57 }
 0x3c7   : > { %v4500_v18 = vpop.eup %4499  ;;  %4213 = vmatmul.mubr.msk.f32.gmra.mrb[20].mxu0 %vm1816_vm3, %v2834_v60  ;;  %v2836_v23 = vmul.f32 %v4498_v13, %v5149_v48  ;;  %v4685_v60 = vmov 0.0   ;;  %v4332_v13 = vpack.c.bf16 %v3325_v53, %v3324_v9  ;;  %4331 = vmatprep.subr.bf16.mxu1 %v4683_v12 }
 0x3c8   : > { %v2835_v21 = vmul.f32 %v4500_v18, %v5145_v47  ;;  %4226 = vmatprep.mubr.msk.f32.mxu1 %vm4684_vm4, %v4685_v60 }
 0x3ca   : > { %4215 = vmatprep.mubr.msk.f32.mxu0 %vm1816_vm3, %v2835_v21  ;;  %4333 = vmatpush3.bf16.msra.mxu1 %v4332_v13 }
 0x3cb   : > { %4216 = vmatmul.mubr.msk.f32.gmra.mrb[22].mxu0 %vm1816_vm3, %v2836_v23  ;;  %4334 = vmatprep.subr.bf16.mxu1 %v4683_v12 }
 0x482   : > { %v4196_v41 = vpop.f32.mrb[0].mxu0 }
 0x483   : > { %v5263_v16 = vadd.f32 %v4196_v41, %v5260_v30  ;;  %v2955_v17 = vpop.f32.mrb[1].mxu0 }
 0x484   : > { %v5266_v19 = vadd.f32 %v5260_v30, %v2955_v17 }
 0x485   : > { %4501 = vtanh.f32 %v5263_v16  ;;  %v3763_v18 = vmul.f32 -1.442695, %v5263_v16 }
 0x486   : > { %4503 = vtanh.f32 %v5266_v19  ;;  %v4199_v47 = vpop.f32.mrb[2].mxu0  ;;  %v3762_v21 = vmul.f32 -1.442695, %v5266_v19 }
 0x487   : > { %v5271_v48 = vadd.f32 %v4199_v47, %v5260_v30  ;;  %v2965_v22 = vpop.f32.mrb[3].mxu0 }
 0x488   : > { %v5274_v25 = vadd.f32 %v5260_v30, %v2965_v22 }
 0x489   : > { %4505 = vtanh.f32 %v5271_v48  ;;  %v3765_v23 = vmul.f32 -1.442695, %v5271_v48 }
 0x48a   : > { %4507 = vtanh.f32 %v5274_v25  ;;  %v4202_v26 = vpop.f32.mrb[4].mxu0 }
 0x48b   : > { %v5279_v28 = vadd.f32 %v4202_v26, %v5260_v30  ;;  %v2975_v29 = vpop.f32.mrb[5].mxu0 }
 0x48c   : > { %v5282_v50 = vadd.f32 %v5260_v30, %v2975_v29 }
 0x48d   : > { %4509 = vtanh.f32 %v5279_v28  ;;  %v3767_v41 = vmul.f32 -1.442695, %v5279_v28 }
 0x48e   : > { %4511 = vtanh.f32 %v5282_v50  ;;  %v4205_v51 = vpop.f32.mrb[6].mxu0  ;;  %v3766_v17 = vmul.f32 -1.442695, %v5282_v50 }
 0x48f   : > { %v4502_v32 = vpop.eup %4501  ;;  %v5287_v35 = vadd.f32 %v4205_v51, %v5260_v30  ;;  %v2985_v42 = vpop.f32.mrb[7].mxu0 }
 0x490   : > { %v4504_v54 = vpop.eup %4503  ;;  %v5290_v58 = vadd.f32 %v5260_v30, %v2985_v42  ;;  %3180 = vrot.lane.b32.xlu1 %v4502_v32, %s4682_s2 }
 0x491   : > { %4513 = vtanh.f32 %v5287_v35  ;;  %3178 = vrot.lane.b32.xlu0 %v4504_v54, %s4682_s2  ;;  %v3769_v47 = vmul.f32 -1.442695, %v5287_v35 }
 0x492   : > { %4515 = vtanh.f32 %v5290_v58  ;;  %v4208_v43 = vpop.f32.mrb[8].mxu0  ;;  %v3768_v16 = vmul.f32 -1.442695, %v5290_v58 }
 0x493   : > { %v4506_v44 = vpop.eup %4505  ;;  %v2995_v45 = vpop.f32.mrb[9].mxu0  ;;  %v5299_v52 = vadd.f32 %v4208_v43, %v5260_v30 }
 0x494   : > { %v4508_v61 = vpop.eup %4507  ;;  %3184 = vrot.lane.b32.xlu1 %v4506_v44, %s4682_s2  ;;  %v5309_v8 = vadd.f32 %v5260_v30, %v2995_v45 }
 0x495   : > { %3182 = vrot.lane.b32.xlu0 %v4508_v61, %s4682_s2  ;;  %4517 = vtanh.f32 %v5299_v52  ;;  %v3771_v51 = vmul.f32 -1.442695, %v5299_v52 }
 0x496   : > { %v4211_v1 = vpop.f32.mrb[10].mxu0  ;;  %4519 = vtanh.f32 %v5309_v8  ;;  %v3770_v35 = vmul.f32 -1.442695, %v5309_v8 }
 0x497   : > { %v4510_v46 = vpop.eup %4509  ;;  %v3005_v0 = vpop.f32.mrb[11].mxu0  ;;  %v5319_v38 = vadd.f32 %v4211_v1, %v5260_v30 }
 0x498   : > { %v4512_v49 = vpop.eup %4511  ;;  %3188 = vrot.lane.b32.xlu1 %v4510_v46, %s4682_s2  ;;  %v5331_v39 = vadd.f32 %v5260_v30, %v3005_v0  ;;  %v3764_v30 = vmul.f32 -1.442695, %v5274_v25 }
 0x499   : > { %3186 = vrot.lane.b32.xlu0 %v4512_v49, %s4682_s2  ;;  %4521 = vtanh.f32 %v5319_v38  ;;  %v3773_v45 = vmul.f32 -1.442695, %v5319_v38 }
 0x49a   : > { %v4214_v55 = vpop.f32.mrb[20].mxu0  ;;  %4523 = vtanh.f32 %v5331_v39  ;;  %v3772_v46 = vmul.f32 -1.442695, %v5331_v39 }
 0x49b   : > { %v4514_v59 = vpop.eup %4513  ;;  %v5311_v62 = vadd.f32 %v4214_v55, %v869_v56  ;;  %v3015_v3 = vpop.f32.mrb[21].mxu0 }
 0x49c   : > { %v4516_v63 = vpop.eup %4515  ;;  %v5313_v11 = vadd.f32 %v3015_v3, %v868_v4  ;;  %3192 = vrot.lane.b32.xlu1 %v4514_v59, %s4682_s2 }
 0x49d   : > { %3190 = vrot.lane.b32.xlu0 %v4516_v63, %s4682_s2  ;;  %4525 = vtanh.f32 %v5311_v62  ;;  %v3775_v59 = vmul.f32 -1.442695, %v5311_v62 }
 0x49e   : > { %v4217_v20 = vpop.f32.mrb[22].mxu0  ;;  %4527 = vtanh.f32 %v5313_v11 }
 0x49f   : > { %v5325_v10 = vadd.f32 %v4217_v20, %v871_v37  ;;  %v3025_v24 = vpop.f32.mrb[23].mxu0  ;;  %v4518_v14 = vpop.eup %4517  ;;  %v3774_v20 = vmul.f32 -1.442695, %v5313_v11 }
 0x4a0   : > { %v5327_v27 = vadd.f32 %v3025_v24, %v870_v15  ;;  %3196 = vrot.lane.b32.xlu1 %v4518_v14, %s4682_s2  ;;  %v4520_v40 = vpop.eup %4519 }
 0x4a1   : > { %3194 = vrot.lane.b32.xlu0 %v4520_v40, %s4682_s2  ;;  %4529 = vtanh.f32 %v5325_v10 }
 0x4a2   : > { %4531 = vtanh.f32 %v5327_v27 }
 0x4a3   : > { %v4522_v31 = vpop.eup %4521  ;;  %4533 = vpow2.f32 %v3763_v18 }
 0x4a4   : > { %3200 = vrot.lane.b32.xlu1 %v4522_v31, %s4682_s2  ;;  %v4524_v33 = vpop.eup %4523  ;;  %4535 = vpow2.f32 %v3762_v21 }
 0x4a5   : > { %3198 = vrot.lane.b32.xlu0 %v4524_v33, %s4682_s2  ;;  %4537 = vpow2.f32 %v3765_v23 }
 0x4a6   : > { %4539 = vpow2.f32 %v3764_v30 }
 0x4a7   : > { %v4526_v2 = vpop.eup %4525  ;;  %4541 = vpow2.f32 %v3767_v41 }
 0x4a8   : > { %3204 = vrot.lane.b32.xlu1 %v4526_v2, %s4682_s2  ;;  %v4528_v5 = vpop.eup %4527  ;;  %4543 = vpow2.f32 %v3766_v17 }
 0x4a9   : > { %3202 = vrot.lane.b32.xlu0 %v4528_v5, %s4682_s2  ;;  %4545 = vpow2.f32 %v3769_v47 }
 0x4aa   : > { %4547 = vpow2.f32 %v3768_v16 }
 0x4ab   : > { %v4530_v34 = vpop.eup %4529 }
 0x4ac   : > { %3208 = vrot.lane.b32.xlu1 %v4530_v34, %s4682_s2  ;;  %v4532_v6 = vpop.eup %4531  ;;  %v3777_v34 = vmul.f32 -1.442695, %v5325_v10  ;;  %v3776_v10 = vmul.f32 -1.442695, %v5327_v27 }
 0x4ad   : > { %3206 = vrot.lane.b32.xlu0 %v4532_v6, %s4682_s2  ;;  %v4534_v22 = vpop.eup %4533  ;;  %s5495_s2 = sand.u32 1, %s4671_s25  }
 0x4ae   : > { %v4536_v19 = vpop.eup %4535  ;;  %v3099_v26 = vadd.f32 1.0, %v4534_v22  ;;  %s3633_s29 = sshll.u32 %s5495_s2, 3  ;;  %s4686_s2 = smov 32  }
 0x4af   : > { %v4538_v48 = vpop.eup %4537  ;;  %v3098_v29 = vadd.f32 1.0, %v4536_v19  ;;  %s5405_s30 = scalar_lea.vmem [#allocation2], %s3633_s29  ;;  %s3533_s29 = scalar_lea.sflag [#allocation3], %s5509_s23 }
 0x4b0   : > { %v4540_v25 = vpop.eup %4539  ;;  %4549 = vrcp.f32 %v3099_v26  ;;  %v3101_v28 = vadd.f32 1.0, %v4538_v48  ;;  %s3546_s22 = sshll.u32 %s5405_s30, 4  ;;  %s5432_s22 = int_to_ptr.vmem [resolvable:$true] %s3546_s22 }
 0x4b1   : > { %v4542_v32 = vpop.eup %4541  ;;  %4551 = vrcp.f32 %v3098_v29  ;;  %v3100_v50 = vadd.f32 1.0, %v4540_v25  ;;  %s4617_s28 = scalar_lea.vmem %s5432_s22, 128 }
 0x4b2   : > { %v4544_v42 = vpop.eup %4543  ;;  %4553 = vpow2.f32 %v3771_v51  ;;  %v3103_v54 = vadd.f32 1.0, %v4542_v32  ;;  %p4618_p11 = scmp.ne.s32.totalorder %s5432_s22, %s4617_s28 }
 0x4b3   : > { %4555 = vrcp.f32 %v3101_v28  ;;  %v4546_v58 = vpop.eup %4545  ;;  %v3102_v43 = vadd.f32 1.0, %v4544_v42 }
 0x4b4   : > { %4557 = vrcp.f32 %v3100_v50  ;;  %v4548_v44 = vpop.eup %4547  ;;  %v3105_v61 = vadd.f32 1.0, %v4546_v58  ;;  %p4619_p12 = pnand %p4618_p11, %p4816_p5 }
 0x4b5   : > { %4559 = vpow2.f32 %v3770_v35  ;;  %v3104_v52 = vadd.f32 1.0, %v4548_v44 }
 0x4b6   : > { %4561 = vrcp.f32 %v3103_v54  ;;  %p4620_p13 = pneg %p4619_p12 }
 0x4b7   : > { %4563 = vrcp.f32 %v3102_v43 }
 0x4b8   : > { %4565 = vpow2.f32 %v3773_v45 }
 0x4b9   : > { %4567 = vrcp.f32 %v3105_v61 }
 0x4ba   : > { %v4550_v1 = vpop.eup %4549  ;;  %4569 = vrcp.f32 %v3104_v52 }
 0x4bb   : > { %v4552_v49 = vpop.eup %4551  ;;  %4571 = vpow2.f32 %v3772_v46 }
 0x4bc   : > { %v4554_v55 = vpop.eup %4553  ;;  %4573 = vpow2.f32 %v3775_v59 }
 0x4bd   : > { %v4556_v63 = vpop.eup %4555  ;;  %v3107_v33 = vadd.f32 1.0, %v4554_v55  ;;  %4575 = vpow2.f32 %v3774_v20 }
 0x4be   : > { %v4558_v15 = vpop.eup %4557 }
 0x4bf   : > { %v4560_v31 = vpop.eup %4559  ;;  %4577 = vrcp.f32 %v3107_v33 }
 0x4c0   : > { %v4562_v5 = vpop.eup %4561  ;;  %v3106_v13 = vadd.f32 1.0, %v4560_v31  ;;  %4579 = vpow2.f32 %v3777_v34 }
 0x4c1   : > { %v4564_v7 = vpop.eup %4563 }
 0x4c2   : > { %v4566_v21 = vpop.eup %4565  ;;  %4581 = vrcp.f32 %v3106_v13 }
 0x4c3   : > { %v4568_v17 = vpop.eup %4567  ;;  %v3109_v28 = vadd.f32 1.0, %v4566_v21  ;;  %4583 = vpow2.f32 %v3776_v10 }
 0x4c4   : > { %v4570_v22 = vpop.eup %4569 }
 0x4c5   : > { %v4572_v51 = vpop.eup %4571  ;;  %4585 = vrcp.f32 %v3109_v28 }
 0x4c6   : > { %v4574_v58 = vpop.eup %4573  ;;  %v3108_v43 = vadd.f32 1.0, %v4572_v51 }
 0x4c8   : > { %4587 = vrcp.f32 %v3108_v43 }
 0x502   : > { %v3181_v0 = vpop.permute.xlu1 %3180 }
 0x503   : > { %v3227_v56 = vmul.f32 %v4550_v1, %v3181_v0  ;;  %v3179_v4 = vpop.permute.xlu0 %3178  ;;  %v4576_v1 = vpop.eup %4575 }
 0x504   : > { %v3226_v8 = vmul.f32 %v4552_v49, %v3179_v4  ;;  %v4578_v4 = vpop.eup %4577 }
 0x505   : > { %v3243_v3 = vsel %vm1816_vm3, %v3227_v56, 0.0  ;;  %v3111_v56 = vadd.f32 1.0, %v4574_v58 }
 0x506   : > { %v3242_v37 = vsel %vm1816_vm3, %v3226_v8, 0.0  ;;  %v3185_v38 = vpop.permute.xlu1 %3184 }
 0x507   : > { %v3244_v24 = vadd.f32 %v3243_v3, %v3242_v37  ;;  %v3229_v39 = vmul.f32 %v4556_v63, %v3185_v38  ;;  %v3183_v14 = vpop.permute.xlu0 %3182  ;;  %v4580_v63 = vpop.eup %4579  ;;  %v3110_v37 = vadd.f32 1.0, %v4576_v1 }
 0x508   : > { %v3228_v40 = vmul.f32 %v4558_v15, %v3183_v14  ;;  %v3113_v33 = vadd.f32 1.0, %v4580_v63 }
 0x509   : > { %v3245_v2 = vrot.slane %v3244_v24, 4  ;;  %v3252_v62 = vsel %vm1816_vm3, %v3229_v39, 0.0 }
 0x50a   : > { %v3251_v6 = vsel %vm1816_vm3, %v3228_v40, 0.0  ;;  %v3189_v36 = vpop.permute.xlu1 %3188 }
 0x50b   : > { %v3246_v9 = vadd.f32 %v3245_v2, %v3244_v24  ;;  %v3253_v11 = vadd.f32 %v3252_v62, %v3251_v6  ;;  %v3231_v57 = vmul.f32 %v4562_v5, %v3189_v36  ;;  %v3187_v53 = vpop.permute.xlu0 %3186  ;;  %v4582_v24 = vpop.eup %4581 }
 0x50c   : > { %v3230_v18 = vmul.f32 %v4564_v7, %v3187_v53  ;;  %v4584_v31 = vpop.eup %4583 }
 0x50d   : > { %v3247_v23 = vrot.slane %v3246_v9, 2  ;;  %v3254_v30 = vrot.slane %v3253_v11, 4  ;;  %v3261_v41 = vsel %vm1816_vm3, %v3231_v57, 0.0  ;;  %v4586_v34 = vpop.eup %4585  ;;  %v3112_v7 = vadd.f32 1.0, %v4584_v31 }
 0x50e   : > { %v3260_v47 = vsel %vm1816_vm3, %v3230_v18, 0.0  ;;  %v3193_v16 = vpop.permute.xlu1 %3192  ;;  %v4588_v53 = vpop.eup %4587 }
 0x50f   : > { %v3248_v19 = vadd.f32 %v3247_v23, %v3246_v9  ;;  %v3255_v26 = vadd.f32 %v3254_v30, %v3253_v11  ;;  %v3262_v48 = vadd.f32 %v3261_v41, %v3260_v47  ;;  %v3233_v29 = vmul.f32 %v4568_v17, %v3193_v16  ;;  %v3191_v25 = vpop.permute.xlu0 %3190 }
 0x510   : > { %v3232_v32 = vmul.f32 %v4570_v22, %v3191_v25 }
 0x511   : > { %v3249_v50 = vrot.slane %v3248_v19, 1  ;;  %v3256_v42 = vrot.slane %v3255_v26, 2  ;;  %v3263_v35 = vrot.slane %v3262_v48, 4  ;;  %v3270_v54 = vsel %vm1816_vm3, %v3233_v29, 0.0 }
 0x512   : > { %v3269_v27 = vsel %vm1816_vm3, %v3232_v32, 0.0  ;;  %v3197_v3 = vpop.permute.xlu1 %3196 }
 0x513   : > { %v3257_v44 = vadd.f32 %v3256_v42, %v3255_v26  ;;  %v3264_v45 = vadd.f32 %v3263_v35, %v3262_v48  ;;  %v3271_v61 = vadd.f32 %v3270_v54, %v3269_v27  ;;  %v3250_v52 = vadd.f32 %v3249_v50, %v3248_v19  ;;  %v3195_v40 = vpop.permute.xlu0 %3194 }
 0x514   : > { %v3235_v38 = vmul.f32 %v4578_v4, %v3197_v3  ;;  %v3234_v62 = vmul.f32 %v4582_v24, %v3195_v40 }
 0x515   : > { %v3258_v46 = vrot.slane %v3257_v44, 1  ;;  %v3265_v0 = vrot.slane %v3264_v45, 2  ;;  %v3272_v49 = vrot.slane %v3271_v61, 4  ;;  %4589 = vtanh.f32 %v3250_v52 }
 0x516   : > { %v3279_v2 = vsel %vm1816_vm3, %v3235_v38, 0.0  ;;  %v3278_v6 = vsel %vm1816_vm3, %v3234_v62, 0.0  ;;  %v3201_v36 = vpop.permute.xlu1 %3200 }
 0x517   : > { %v3259_v8 = vadd.f32 %v3258_v46, %v3257_v44  ;;  %v3266_v55 = vadd.f32 %v3265_v0, %v3264_v45  ;;  %v3273_v59 = vadd.f32 %v3272_v49, %v3271_v61  ;;  %v3280_v11 = vadd.f32 %v3279_v2, %v3278_v6  ;;  %v3199_v21 = vpop.permute.xlu0 %3198 }
 0x518   : > { %v3237_v57 = vmul.f32 %v4586_v34, %v3201_v36  ;;  %v3236_v17 = vmul.f32 %v4588_v53, %v3199_v21  ;;  %v3429_v53 = vld [vmem:[%s5492_s15 + $0x8] sm:$0xff] }
 0x519   : > { %4591 = vtanh.f32 %v3259_v8  ;;  %v3267_v15 = vrot.slane %v3266_v55, 1  ;;  %v3274_v20 = vrot.slane %v3273_v59, 2  ;;  %v3281_v13 = vrot.slane %v3280_v11, 4 }
 0x51a   : > { %4593 = vrcp.f32 %v3111_v56  ;;  %v3288_v41 = vsel %vm1816_vm3, %v3237_v57, 0.0  ;;  %v3205_v47 = vpop.permute.xlu1 %3204  ;;  %v3287_v19 = vsel %vm1816_vm3, %v3236_v17, 0.0  ;;  %v3428_v57 = vld [vmem:[%s5492_s15] sm:$0xff] }
 0x51b   : > { %v3268_v39 = vadd.f32 %v3267_v15, %v3266_v55  ;;  %v3275_v14 = vadd.f32 %v3274_v20, %v3273_v59  ;;  %4595 = vrcp.f32 %v3110_v37  ;;  %v3282_v30 = vadd.f32 %v3281_v13, %v3280_v11  ;;  %v3203_v28 = vpop.permute.xlu0 %3202  ;;  %v3778_v17 = vld [vmem:[%s5491_s14] ss:$0 sm:$0xff] }
 0x51c   : > { %v3289_v29 = vadd.f32 %v3288_v41, %v3287_v19  ;;  %v4335_v13 = vpack.c.bf16 %v3429_v53, %v3428_v57 }
 0x51d   : > { %4597 = vtanh.f32 %v3268_v39  ;;  %v3276_v5 = vrot.slane %v3275_v14, 1  ;;  %v3283_v22 = vrot.slane %v3282_v30, 2 }
 0x51e   : > { %4599 = vrcp.f32 %v3113_v33  ;;  %v3290_v32 = vrot.slane %v3289_v29, 4  ;;  %v3209_v44 = vpop.permute.xlu1 %3208 }
 0x51f   : > { %v3277_v9 = vadd.f32 %v3276_v5, %v3275_v14  ;;  %v4590_v18 = vpop.eup %4589  ;;  %v3284_v51 = vadd.f32 %v3283_v22, %v3282_v30  ;;  %v3207_v4 = vpop.permute.xlu0 %3206  ;;  %v3431_v30 = vld [vmem:[%s5492_s15 + $0x18] sm:$0xff] }
 0x520   : > { %v3291_v58 = vadd.f32 %v3290_v32, %v3289_v29 }
 0x521   : > { %4601 = vtanh.f32 %v3277_v9  ;;  %v3285_v54 = vrot.slane %v3284_v51, 1 }
 0x522   : > { %4603 = vrcp.f32 %v3112_v7  ;;  %v3292_v46 = vrot.slane %v3291_v58, 2 }
 0x523   : > { %v4592_v23 = vpop.eup %4591  ;;  %v3286_v61 = vadd.f32 %v3285_v54, %v3284_v51 }
 0x524   : > { %v4594_v10 = vpop.eup %4593  ;;  %v3342_v16 = vsel %vm3341_vm5, %v4592_v23, %v4590_v18  ;;  %v3293_v8 = vadd.f32 %v3292_v46, %v3291_v58  ;;  %v3430_v23 = vld [vmem:[%s5492_s15 + $0x10] sm:$0xff] }
 0x525   : > { %v3239_v26 = vmul.f32 %v4594_v10, %v3205_v47  ;;  %v4596_v48 = vpop.eup %4595  ;;  %4605 = vtanh.f32 %v3286_v61  ;;  %v4338_v41 = vpack.c.bf16 %v3431_v30, %v3430_v23 }
 0x526   : > { %v3238_v42 = vmul.f32 %v4596_v48, %v3203_v28  ;;  %v3294_v63 = vrot.slane %v3293_v8, 1  ;;  %v3512_v28 = vlaneseq }
 0x527   : > { %v4598_v25 = vpop.eup %4597  ;;  %v3297_v50 = vsel %vm1816_vm3, %v3239_v26, 0.0 }
 0x528   : > { %v3344_v35 = vsel %vm3343_vm6, %v4598_v25, %v3342_v16  ;;  %v4600_v27 = vpop.eup %4599  ;;  %v3296_v43 = vsel %vm1816_vm3, %v3238_v42, 0.0  ;;  %v3295_v20 = vadd.f32 %v3294_v63, %v3293_v8  ;;  %v3513_v32 = vand.u32 127, %v3512_v28 }
 0x529   : > { %v3298_v52 = vadd.f32 %v3297_v50, %v3296_v43  ;;  %v3241_v1 = vmul.f32 %v4600_v27, %v3209_v44 }
 0x52a   : > { %4607 = vtanh.f32 %v3295_v20  ;;  %vm3514_vm12 = vcmp.eq.s32.totalorder %v3513_v32, 0 }
 0x52b   : > { %v4602_v45 = vpop.eup %4601  ;;  %v3299_v56 = vrot.slane %v3298_v52, 4  ;;  %v3306_v55 = vsel %vm1816_vm3, %v3241_v1, 0.0 }
 0x52c   : > { %v3346_v0 = vsel %vm3345_vm7, %v4602_v45, %v3344_v35  ;;  %v4604_v49 = vpop.eup %4603 }
 0x52d   : > { %v3240_v59 = vmul.f32 %v4604_v49, %v3207_v4  ;;  %v3300_v3 = vadd.f32 %v3299_v56, %v3298_v52 }
 0x52f   : > { %v3305_v37 = vsel %vm1816_vm3, %v3240_v59, 0.0  ;;  %v3301_v38 = vrot.slane %v3300_v3, 2  ;;  %v4606_v31 = vpop.eup %4605 }
 0x530   : > { %v3307_v15 = vadd.f32 %v3306_v55, %v3305_v37  ;;  %v3348_v62 = vsel %vm3347_vm8, %v4606_v31, %v3346_v0 }
 0x531   : > { %v3302_v24 = vadd.f32 %v3301_v38, %v3300_v3 }
 0x532   : > { %v3308_v39 = vrot.slane %v3307_v15, 4 }
 0x533   : > { %v3303_v14 = vrot.slane %v3302_v24, 1 }
 0x534   : > { %v3309_v40 = vadd.f32 %v3308_v39, %v3307_v15  ;;  %v4608_v36 = vpop.eup %4607 }
 0x535   : > { %v3304_v33 = vadd.f32 %v3303_v14, %v3302_v24  ;;  %v3350_v7 = vsel %vm3349_vm9, %v4608_v36, %v3348_v62 }
 0x536   : > { %v3310_v2 = vrot.slane %v3309_v40, 2 }
 0x537   : > { %4609 = vtanh.f32 %v3304_v33 }
 0x538   : > { %v3311_v5 = vadd.f32 %v3310_v2, %v3309_v40 }
 0x53a   : > { %v3312_v34 = vrot.slane %v3311_v5, 1 }
 0x53c   : > { %v3313_v6 = vadd.f32 %v3312_v34, %v3311_v5 }
 0x53e   : > { %4611 = vtanh.f32 %v3313_v6 }
 0x541   : > { %v4610_v9 = vpop.eup %4609 }
 0x542   : > { %v3352_v11 = vsel %vm3351_vm10, %v4610_v9, %v3350_v7 }
 0x548   : > { %v4612_v18 = vpop.eup %4611 }
 0x549   : > { %v3354_v21 = vsel %vm3353_vm11, %v4612_v18, %v3352_v11 }
 0x54a   : > { %4227 = vmatmul.mubr.msk.f32.vlgmr.msra.gmra.mrb[52].mxu1 %vm1816_vm3, %v3354_v21  ;;  %3523 = vst.msk [vmem:[%s5405_s30] sm:$0xff] %vm1816_vm3, %v3354_v21 }
 0x54b   : > { %4336 = vmatpush3.bf16.msra.mxu1 %v4335_v13  ;;  %4237 = vmatprep.mubr.msk.f32.mxu1 %vm4684_vm4, %v4685_v60 }
 0x54c   : > { %4337 = vmatprep.subr.bf16.mxu1 %v4683_v12  ;;  %v3780_v12 = vld [vmem:[%s5493_s16] ss:$0 sm:$0xff] }
 0x54f   : > { %4339 = vmatpush3.bf16.msra.mxu1 %v4338_v41 }
 0x61d   : > { %v3423_v10 = vpop.f32.mrb[52].mxu1 }
 0x61e   : > { %v3424_v47 = vadd.f32 %v3778_v17, %v3423_v10  ;;  %v4228_v16 = vpop.f32.mrb[53].mxu1 }
 0x620   : > { %v3427_v22 = vmax.f32 %v3424_v47, 0.0 }
 0x622   : > { %4238 = vmatmul.mubr.msk.f32.vlgmr.msra.gmra.mrb[54].mxu1 %vm1816_vm3, %v3427_v22 }
 0x6f5   : > { %v3508_v19 = vpop.f32.mrb[54].mxu1 }
 0x6f6   : > { %v3509_v26 = vadd.f32 %v3780_v12, %v3508_v19  ;;  %v4239_v48 = vpop.f32.mrb[55].mxu1 }
 0x6f8   : > { %v3782_v29 = vmul.f32 -1.442695, %v3509_v26 }
 0x6fa   : > { %4613 = vpow2.f32 %v3782_v29 }
 0x704   : > { %v4614_v25 = vpop.eup %4613 }
 0x705   : > { %v3518_v51 = vadd.f32 1.0, %v4614_v25 }
 0x707   : > { %4615 = vrcp.f32 %v3518_v51 }
 0x711   : > { %v4616_v50 = vpop.eup %4615 }
 0x712   : > { %v3521_v42 = vsel %vm3514_vm12, %v4616_v50, %v3509_v26 }
 0x713   : > { %3525 = vrot.lane.b32.xlu0 %v3521_v42, %s4686_s2  ;;  %s4687_s2 = smov [#allocation2]  }
 0x714   : > { %s4621_s3 = sshll.u32 %s4687_s2, 4  ;;  %s4622_s3 = int_to_ptr.vmem [resolvable:$false] %s4621_s3 }
 0x715   : > { %s4623_s21 = scalar_lea.vmem %s4622_s3, 256  ;;  %p4624_p0 = scmp.lt.s32.totalorder %s5432_s22, %s4622_s3 }
 0x716   : > { %p4625_p1 = scmp.lt.s32.totalorder %s4623_s21, %s4617_s28 }
 0x718   : > { %p4626_p2 = por %p4625_p1, %p4624_p0 }
 0x71a   : > { %p4627_p3 = pnand %p4626_p2, %p4620_p13 }
 0x785   : > { %v3526_v35 = vpop.permute.xlu0 %3525 }
 0x786   : > { %3529 = vst.msk [vmem:[%s5405_s30] sm:$0xff] %vm3528_vm13, %v3526_v35 }
 0x787   : > { %3531 = vst.msk [vmem:[%s5405_s30] sm:$0xff] %vm3530_vm14, %v4685_v60 }
 0x788   : > { %4630 = shalt.err (!%p4627_p3)
}
 0x789   : > { %s4631_s30 = scalar_lea.hbm %s5430_s19, 128  ;;  %s4635_s23 = scalar_lea.hbm %s5494_s17, 256 }
 0x78a   : > { %p4632_p4 = scmp.ne.s32.totalorder %s5430_s19, %s4631_s30  ;;  %p4636_p9 = scmp.lt.u32.totalorder %s5430_s19, %s5494_s17 }
 0x78b   : > { %p4637_p10 = scmp.lt.u32.totalorder %s4635_s23, %s4631_s30  ;;  %p4639_p12 = scmp.lt.u32.totalorder %s4631_s30, %s5430_s19 }
 0x78c   : > { %p4633_p7 = pnand %p4632_p4, %p4816_p5 }
 0x78d   : > { %p4638_p11 = por %p4637_p10, %p4636_p9 }
 0x78e   : > { %p4634_p8 = pneg %p4633_p7 }
 0x78f   : > { %p4640_p13 = por %p4639_p12, %p4638_p11 }
 0x791   : > { %p4641_p0 = pnand %p4640_p13, %p4634_p8 }
 0x793   : > { %4644 = shalt.err (!%p4641_p0)
}
 0x794   : > { %4390 = dma.vmem_to_hbm [thread:$0]  (%p4816_p5), %s5432_s22, 128, %s5430_s19, %s3533_s29  }
 0x795 PF: > { %p4396_p1 = scmp.ge.s32.totalorder %s4679_s27, 2  ;;  %s3558_s28 = sand.u32 1, %s4667_s24  }
 0x796   : > { %s3559_s21 = scalar_lea.sflag [#allocation3], %s3558_s28 }
 0x797   : > { %p4393_p2 = pnand %p4396_p1, %p4820_p6 }
 0x799   : > { %4662 = dma.done.wait (!%p4393_p2), %s3559_s21, 128  }
 0x79a   : > { %4664 = vsyncadd (!%p4393_p2), %s3559_s21, 4294967168  ;;  %s5510_s30 = sld [smem:[#allocation5_spill]]  ;;  %p27_p3 = scmp.ge.s32.totalorder %s4803_s0, 4  }
 0x79b   : > { %s5511_s24 = smov %s4671_s25  ;;  %s5512_s25 = smov %s4675_s26 }
 0x79c   : > { %s5514_s27 = smov %s4803_s0  ;;  %29 = sbr.rel (!%p27_p3) target bundleno = 9 (0x9), region = 129 }
 0x7a0   : > { %s5513_s26 = smov %s5510_s30 }
 0x7a3   :  { %3564 = vsyncpa [#allocation3], 1 }
 0x7a4   :  { %3566 = vsyncpa [#allocation3 + $0x1], 1 }

</bundles_post_ra>
